<compile_context>
chip_gen: v5e
topology: v5e:2x2
jax: 0.10.0
libtpu: 0.0.40
codegen_flags: <defaults>
</compile_context>

<pallas_src>
import math
import functools

import jax
import jax.numpy as jnp
import numpy as np
from jax import lax
from jax.experimental import pallas as pl
from jax.experimental.pallas import tpu as pltpu

# ---------------- config (small, synthetic "roberta") ----------------
VOCAB = 100
B = 2          # batch
S = 8          # sequence length
H = 32         # hidden size
NUM_HEADS = 4
DH = H // NUM_HEADS
F = 64         # ffn intermediate
L = 2          # number of transformer layers
LN_EPS = 1e-5
M = B * S      # tokens handled per kernel invocation


def _layer_norm_cols(x, gamma, beta, eps=LN_EPS):
    """LayerNorm over axis 0 (feature axis) of a (features, tokens) tensor.

    Fused statistics: a single pass over x produces mean and E[x^2]
    (var = E[x^2] - mu^2); rsqrt runs on the EUP.  All math in f32.
    """
    mu = jnp.mean(x, axis=0, keepdims=True)
    ex2 = jnp.mean(x * x, axis=0, keepdims=True)
    var = ex2 - mu * mu
    return (x - mu) * lax.rsqrt(var + eps) * gamma + beta


def _gelu(x):
    # tanh approximation of GELU (EUP-friendly), f32 math.
    # TODO(synk): HF RoBERTa uses exact erf GELU; tanh approx differs ~1e-3.
    c = math.sqrt(2.0 / math.pi)
    return 0.5 * x * (1.0 + jnp.tanh(c * (x + 0.044715 * x * x * x)))


def roberta_kernel(x_ref, bias_ref, mask_pool_ref,
                   ln_emb_g_ref, ln_emb_b_ref,
                   wqkv_ref, bqkv_ref, wo_ref, bo_ref,
                   ln_g_ref, ln_b_ref,
                   w1_ref, b1_ref, w2_ref, b2_ref,
                   out_ref):
    """Whole batch (M = B*S tokens) in one invocation.

    x_ref:        (H, M)  f32  activations, transposed (features, tokens)
    bias_ref:     (M, M)  f32  additive attention bias (padding + per-sequence
                                block-diagonal; -1e9 for disallowed pairs)
    mask_pool_ref:(B, S, 1) f32 pooling mask
    weights are PyTorch (out, in) layout, bf16; biases / LN params f32 columns.
    """
    x = x_ref[...]                       # (H, M) f32, residual stream
    bias = bias_ref[...]                 # (M, M) f32, hoisted out of all loops

    # ---- embedding LayerNorm (as in RoBERTa embeddings) ----
    x = _layer_norm_cols(x, ln_emb_g_ref[...], ln_emb_b_ref[...])

    scale = 1.0 / math.sqrt(DH)
    for l in range(L):
        # per-layer params loaded once (all-resident at this toy size)
        wqkv = wqkv_ref[l]               # (3H, H) bf16
        bqkv = bqkv_ref[l]               # (3H, 1) f32
        wo = wo_ref[l]                   # (H, H)  bf16
        bo = bo_ref[l]                   # (H, 1)  f32
        g_attn, b_attn = ln_g_ref[l, 0], ln_b_ref[l, 0]   # (H, 1)
        g_ffn, b_ffn = ln_g_ref[l, 1], ln_b_ref[l, 1]     # (H, 1)
        w1, b1 = w1_ref[l], b1_ref[l]    # (F, H) bf16, (F, 1) f32
        w2, b2 = w2_ref[l], b2_ref[l]    # (H, F) bf16, (H, 1) f32

        x_bf = x.astype(jnp.bfloat16)

        # ---- fused QKV projection: one bf16 MXU matmul, f32 accumulation ----
        qkv = jnp.dot(wqkv, x_bf, preferred_element_type=jnp.float32) + bqkv
        q_t = qkv[0 * H:1 * H, :]        # (H, M) — sublane-aligned row slices
        k_t = qkv[1 * H:2 * H, :]
        v_t = qkv[2 * H:3 * H, :]

        # ---- head split: leading-dim reshapes only (lane dim untouched) ----
        k_h = k_t.reshape(NUM_HEADS, DH, M).astype(jnp.bfloat16)   # (NH,DH,M)
        v_h = v_t.reshape(NUM_HEADS, DH, M).astype(jnp.bfloat16)   # (NH,DH,M)
        # q needs (NH, M, DH) for the score matmul; the relayout is NUM_HEADS
        # tiny sublane-aligned row slices + 2-D XLU transposes stacked on the
        # leading axis (no lane shuffles, no lane concatenates).
        q_h = jnp.stack(
            [q_t[h * DH:(h + 1) * DH, :].T for h in range(NUM_HEADS)],
            axis=0).astype(jnp.bfloat16)                            # (NH,M,DH)

        # ---- attention, batched over heads; scores & softmax stay f32 ----
        s = jnp.einsum('hmd,hdn->hmn', q_h, k_h,
                       preferred_element_type=jnp.float32) * scale  # (NH,M,M)
        s = s + bias                      # mask padding + cross-sequence pairs
        s = s - jnp.max(s, axis=-1, keepdims=True)
        e = jnp.exp(s)
        p = e * pl.reciprocal(jnp.sum(e, axis=-1, keepdims=True), approx=True)
        # ctx comes out directly in the transposed layout (NH, DH, M)
        ctx = jnp.einsum('hdn,hmn->hdm', v_h, p.astype(jnp.bfloat16),
                         preferred_element_type=jnp.float32)
        ctx = ctx.reshape(H, M).astype(jnp.bfloat16)  # heads back on features

        # ---- fused output projection: single K=H matmul, no head-reduce ----
        attn = jnp.dot(wo, ctx, preferred_element_type=jnp.float32) + bo

        x = _layer_norm_cols(x + attn, g_attn, b_attn)

        # ---- FFN (bf16 matmul operands, f32 GELU) ----
        x_bf = x.astype(jnp.bfloat16)
        hmid = _gelu(jnp.dot(w1, x_bf, preferred_element_type=jnp.float32) + b1)
        ffn = jnp.dot(w2, hmid.astype(jnp.bfloat16),
                      preferred_element_type=jnp.float32) + b2
        x = _layer_norm_cols(x + ffn, g_ffn, b_ffn)

    # ---- masked mean pooling on the VPU (no MXU), lane-dense (B, H) out ----
    xb = x.T.reshape(B, S, H)                            # (B, S, H)
    mask = mask_pool_ref[...]                            # (B, S, 1)
    pooled = jnp.sum(xb * mask, axis=1)                  # (B, H)
    denom = jnp.maximum(jnp.sum(mask, axis=1), 1e-9)     # (B, 1)
    out_ref[...] = pooled * pl.reciprocal(denom, approx=True)


@jax.jit
def roberta_forward(token_emb, attn_mask, ln_emb, wqkv, bqkv, wo, bo,
                    ln_g, ln_b, w1, b1, w2, b2):
    # Parameter / input plumbing (outside the kernel): activations transposed
    # to (features, tokens); weights to PyTorch (out, in) layout and bf16
    # (MXU-native, halves weight bytes); biases / LN params as (features, 1)
    # f32 columns; the additive attention bias (padding + per-sequence block
    # diagonal) is derived once from the tokenizer's attention mask.
    x_t = token_emb.reshape(M, H).T.astype(jnp.float32)            # (H, M)

    mask_flat = attn_mask.reshape(1, M).astype(jnp.float32)        # (1, M)
    seq_id = (jnp.arange(M, dtype=jnp.int32) // S)
    same_seq = seq_id[:, None] == seq_id[None, :]                  # (M, M)
    allowed = same_seq & (mask_flat > 0.5)
    attn_bias = jnp.where(allowed, 0.0, -1e9).astype(jnp.float32)  # (M, M)
    mask_pool = attn_mask.reshape(B, S, 1).astype(jnp.float32)     # (B, S, 1)

    ln_emb_g = ln_emb[0].reshape(H, 1)
    ln_emb_b = ln_emb[1].reshape(H, 1)
    wqkv_t = jnp.transpose(wqkv, (0, 2, 1)).astype(jnp.bfloat16)   # (L,3H,H)
    bqkv_t = jnp.transpose(bqkv, (0, 2, 1))                        # (L,3H,1)
    wo_t = jnp.transpose(wo, (0, 2, 1)).astype(jnp.bfloat16)       # (L,H,H)
    bo_t = jnp.transpose(bo, (0, 2, 1))                            # (L,H,1)
    w1_t = jnp.transpose(w1, (0, 2, 1)).astype(jnp.bfloat16)       # (L,F,H)
    b1_t = jnp.transpose(b1, (0, 2, 1))                            # (L,F,1)
    w2_t = jnp.transpose(w2, (0, 2, 1)).astype(jnp.bfloat16)       # (L,H,F)
    b2_t = jnp.transpose(b2, (0, 2, 1))                            # (L,H,1)
    ln_g_t = ln_g.reshape(L, 2, H, 1)
    ln_b_t = ln_b.reshape(L, 2, H, 1)

    vmem = functools.partial(pl.BlockSpec, memory_space=pltpu.MemorySpace.VMEM)
    out = pl.pallas_call(
        roberta_kernel,
        out_shape=jax.ShapeDtypeStruct((B, H), jnp.float32),
        in_specs=[vmem()] * 15,
        out_specs=vmem(),
    )(x_t, attn_bias, mask_pool, ln_emb_g, ln_emb_b,
      wqkv_t, bqkv_t, wo_t, bo_t, ln_g_t, ln_b_t, w1_t, b1_t, w2_t, b2_t)
    return out


# ---------------- pure-JAX reference (for sanity checking) ----------------
def _layer_norm_ref(x, gamma, beta, eps=LN_EPS):
    mu = jnp.mean(x, axis=-1, keepdims=True)
    var = jnp.mean((x - mu) ** 2, axis=-1, keepdims=True)
    return (x - mu) * lax.rsqrt(var + eps) * gamma + beta


def roberta_reference(token_emb, attn_mask, ln_emb, wqkv, bqkv, wo, bo,
                      ln_g, ln_b, w1, b1, w2, b2):
    x = _layer_norm_ref(token_emb, ln_emb[0][None, None, :],
                        ln_emb[1][None, None, :])
    mask = attn_mask.astype(jnp.float32)                      # (B, S)
    scale = 1.0 / math.sqrt(DH)
    for l in range(L):
        qkv = x @ wqkv[l] + bqkv[l]                           # (B, S, 3H)
        q, k, v = qkv[..., :H], qkv[..., H:2 * H], qkv[..., 2 * H:]
        qh = q.reshape(B, S, NUM_HEADS, DH).transpose(0, 2, 1, 3)
        kh = k.reshape(B, S, NUM_HEADS, DH).transpose(0, 2, 1, 3)
        vh = v.reshape(B, S, NUM_HEADS, DH).transpose(0, 2, 1, 3)
        s = jnp.einsum('bhqd,bhkd->bhqk', qh, kh) * scale
        s = s + (mask[:, None, None, :] - 1.0) * 1e9
        p = jax.nn.softmax(s, axis=-1)
        ctx = jnp.einsum('bhqk,bhkd->bhqd', p, vh)
        ctx = ctx.transpose(0, 2, 1, 3).reshape(B, S, H)
        attn_out = ctx @ wo[l] + bo[l]
        x = _layer_norm_ref(x + attn_out,
                            ln_g[l, 0][None, None, :], ln_b[l, 0][None, None, :])
        hmid = _gelu(x @ w1[l] + b1[l])
        ffn = hmid @ w2[l] + b2[l]
        x = _layer_norm_ref(x + ffn,
                            ln_g[l, 1][None, None, :], ln_b[l, 1][None, None, :])
    summed = jnp.sum(x * mask[:, :, None], axis=1)
    denom = jnp.maximum(jnp.sum(mask, axis=1, keepdims=True), 1e-9)
    return summed / denom


if __name__ == "__main__":
    key = jax.random.PRNGKey(0)
    keys = jax.random.split(key, 12)

    # deterministic synthetic parameters (fused QKV weight, natural layout)
    word_emb = jax.random.normal(keys[0], (VOCAB, H), jnp.float32) * 0.02
    pos_emb = jax.random.normal(keys[1], (S, H), jnp.float32) * 0.02
    ln_emb = jnp.stack([jnp.ones((H,), jnp.float32),
                        jnp.zeros((H,), jnp.float32)])           # (2, H)
    wqkv = jax.random.normal(keys[2], (L, H, 3 * H), jnp.float32) * 0.02
    bqkv = jax.random.normal(keys[3], (L, 1, 3 * H), jnp.float32) * 0.02
    wo = jax.random.normal(keys[4], (L, H, H), jnp.float32) * 0.02
    bo = jax.random.normal(keys[5], (L, 1, H), jnp.float32) * 0.02
    ln_g = jnp.ones((L, 2, H), jnp.float32)
    ln_b = jnp.zeros((L, 2, H), jnp.float32)
    w1 = jax.random.normal(keys[6], (L, H, F), jnp.float32) * 0.02
    b1 = jax.random.normal(keys[7], (L, 1, F), jnp.float32) * 0.02
    w2 = jax.random.normal(keys[8], (L, F, H), jnp.float32) * 0.02
    b2 = jax.random.normal(keys[9], (L, 1, H), jnp.float32) * 0.02

    # deterministic "tokenized" input: ids + attention mask (batch 1 padded)
    token_ids = jax.random.randint(keys[10], (B, S), 0, VOCAB)
    attn_mask = jnp.array([[1.0] * S,
                           [1.0] * (S - 3) + [0.0] * 3], dtype=jnp.float32)

    # embedding lookup (glue, plain JAX)
    token_emb = word_emb[token_ids] + pos_emb[None, :, :]        # (B, S, H)

    out = roberta_forward(token_emb, attn_mask, ln_emb, wqkv, bqkv,
                          wo, bo, ln_g, ln_b, w1, b1, w2, b2)
    out = jax.block_until_ready(out)

    ref = roberta_reference(token_emb, attn_mask, ln_emb, wqkv, bqkv,
                            wo, bo, ln_g, ln_b, w1, b1, w2, b2)
    np.testing.assert_allclose(np.asarray(out), np.asarray(ref),
                               rtol=2e-2, atol=2e-2)

    assert out.shape == (B, H)
    print("KERNEL_OK")
</pallas_src>

<mosaic_0001>
module attributes {stable_mosaic.version = 11 : i64} {
  func.func @roberta_kernel(%arg0: memref<32x16xf32, #tpu.memory_space<vmem>>, %arg1: memref<16x16xf32, #tpu.memory_space<vmem>>, %arg2: memref<2x8x1xf32, #tpu.memory_space<vmem>>, %arg3: memref<32x1xf32, #tpu.memory_space<vmem>>, %arg4: memref<32x1xf32, #tpu.memory_space<vmem>>, %arg5: memref<2x96x32xbf16, #tpu.memory_space<vmem>>, %arg6: memref<2x96x1xf32, #tpu.memory_space<vmem>>, %arg7: memref<2x32x32xbf16, #tpu.memory_space<vmem>>, %arg8: memref<2x32x1xf32, #tpu.memory_space<vmem>>, %arg9: memref<2x2x32x1xf32, #tpu.memory_space<vmem>>, %arg10: memref<2x2x32x1xf32, #tpu.memory_space<vmem>>, %arg11: memref<2x64x32xbf16, #tpu.memory_space<vmem>>, %arg12: memref<2x64x1xf32, #tpu.memory_space<vmem>>, %arg13: memref<2x32x64xbf16, #tpu.memory_space<vmem>>, %arg14: memref<2x32x1xf32, #tpu.memory_space<vmem>>, %arg15: memref<2x32xf32, #tpu.memory_space<vmem>>) attributes {dimension_semantics = [], scalar_prefetch = 0 : i64, scratch_operands = 0 : i64, tpu.core_type = #tpu.core_type<tc>} {
    %c0 = arith.constant 0 : index
    %c0_0 = arith.constant 0 : index
    %0 = vector.load %arg0[%c0, %c0_0] : memref<32x16xf32, #tpu.memory_space<vmem>>, vector<32x16xf32>
    %c0_1 = arith.constant 0 : index
    %c0_2 = arith.constant 0 : index
    %1 = vector.load %arg1[%c0_1, %c0_2] : memref<16x16xf32, #tpu.memory_space<vmem>>, vector<16x16xf32>
    %c0_3 = arith.constant 0 : index
    %c0_4 = arith.constant 0 : index
    %2 = vector.load %arg3[%c0_3, %c0_4] : memref<32x1xf32, #tpu.memory_space<vmem>>, vector<32x1xf32>
    %c0_5 = arith.constant 0 : index
    %c0_6 = arith.constant 0 : index
    %3 = vector.load %arg4[%c0_5, %c0_6] : memref<32x1xf32, #tpu.memory_space<vmem>>, vector<32x1xf32>
    %cst = arith.constant dense<0.000000e+00> : vector<16xf32>
    %4 = vector.multi_reduction <add>, %0, %cst [0] : vector<32x16xf32> to vector<16xf32>
    %5 = vector.shape_cast %4 : vector<16xf32> to vector<1x16xf32>
    %cst_7 = arith.constant 3.200000e+01 : f32
    %6 = vector.broadcast %cst_7 : f32 to vector<1x16xf32>
    %7 = arith.divf %5, %6 : vector<1x16xf32>
    %8 = arith.mulf %0, %0 : vector<32x16xf32>
    %cst_8 = arith.constant dense<0.000000e+00> : vector<16xf32>
    %9 = vector.multi_reduction <add>, %8, %cst_8 [0] : vector<32x16xf32> to vector<16xf32>
    %10 = vector.shape_cast %9 : vector<16xf32> to vector<1x16xf32>
    %cst_9 = arith.constant 3.200000e+01 : f32
    %11 = vector.broadcast %cst_9 : f32 to vector<1x16xf32>
    %12 = arith.divf %10, %11 : vector<1x16xf32>
    %13 = arith.mulf %7, %7 : vector<1x16xf32>
    %14 = arith.subf %12, %13 : vector<1x16xf32>
    %15 = vector.broadcast %7 : vector<1x16xf32> to vector<32x16xf32>
    %16 = arith.subf %0, %15 : vector<32x16xf32>
    %cst_10 = arith.constant 9.99999974E-6 : f32
    %17 = vector.broadcast %cst_10 : f32 to vector<1x16xf32>
    %18 = arith.addf %14, %17 : vector<1x16xf32>
    %19 = math.rsqrt %18 : vector<1x16xf32>
    %20 = vector.broadcast %19 : vector<1x16xf32> to vector<32x16xf32>
    %21 = arith.mulf %16, %20 : vector<32x16xf32>
    %22 = vector.broadcast %2 : vector<32x1xf32> to vector<32x16xf32>
    %23 = arith.mulf %21, %22 : vector<32x16xf32>
    %24 = vector.broadcast %3 : vector<32x1xf32> to vector<32x16xf32>
    %25 = arith.addf %23, %24 : vector<32x16xf32>
    %c0_11 = arith.constant 0 : index
    %c0_12 = arith.constant 0 : index
    %c0_13 = arith.constant 0 : index
    %26 = vector.load %arg5[%c0_11, %c0_12, %c0_13] : memref<2x96x32xbf16, #tpu.memory_space<vmem>>, vector<1x96x32xbf16>
    %27 = vector.shape_cast %26 : vector<1x96x32xbf16> to vector<96x32xbf16>
    %c0_14 = arith.constant 0 : index
    %c0_15 = arith.constant 0 : index
    %c0_16 = arith.constant 0 : index
    %28 = vector.load %arg6[%c0_14, %c0_15, %c0_16] : memref<2x96x1xf32, #tpu.memory_space<vmem>>, vector<1x96x1xf32>
    %29 = vector.shape_cast %28 : vector<1x96x1xf32> to vector<96x1xf32>
    %c0_17 = arith.constant 0 : index
    %c0_18 = arith.constant 0 : index
    %c0_19 = arith.constant 0 : index
    %30 = vector.load %arg7[%c0_17, %c0_18, %c0_19] : memref<2x32x32xbf16, #tpu.memory_space<vmem>>, vector<1x32x32xbf16>
    %31 = vector.shape_cast %30 : vector<1x32x32xbf16> to vector<32x32xbf16>
    %c0_20 = arith.constant 0 : index
    %c0_21 = arith.constant 0 : index
    %c0_22 = arith.constant 0 : index
    %32 = vector.load %arg8[%c0_20, %c0_21, %c0_22] : memref<2x32x1xf32, #tpu.memory_space<vmem>>, vector<1x32x1xf32>
    %33 = vector.shape_cast %32 : vector<1x32x1xf32> to vector<32x1xf32>
    %c0_23 = arith.constant 0 : index
    %c0_24 = arith.constant 0 : index
    %c0_25 = arith.constant 0 : index
    %c0_26 = arith.constant 0 : index
    %34 = vector.load %arg9[%c0_23, %c0_24, %c0_25, %c0_26] : memref<2x2x32x1xf32, #tpu.memory_space<vmem>>, vector<1x1x32x1xf32>
    %35 = vector.shape_cast %34 : vector<1x1x32x1xf32> to vector<32x1xf32>
    %c0_27 = arith.constant 0 : index
    %c0_28 = arith.constant 0 : index
    %c0_29 = arith.constant 0 : index
    %c0_30 = arith.constant 0 : index
    %36 = vector.load %arg10[%c0_27, %c0_28, %c0_29, %c0_30] : memref<2x2x32x1xf32, #tpu.memory_space<vmem>>, vector<1x1x32x1xf32>
    %37 = vector.shape_cast %36 : vector<1x1x32x1xf32> to vector<32x1xf32>
    %c0_31 = arith.constant 0 : index
    %c1 = arith.constant 1 : index
    %c0_32 = arith.constant 0 : index
    %c0_33 = arith.constant 0 : index
    %38 = vector.load %arg9[%c0_31, %c1, %c0_32, %c0_33] : memref<2x2x32x1xf32, #tpu.memory_space<vmem>>, vector<1x1x32x1xf32>
    %39 = vector.shape_cast %38 : vector<1x1x32x1xf32> to vector<32x1xf32>
    %c0_34 = arith.constant 0 : index
    %c1_35 = arith.constant 1 : index
    %c0_36 = arith.constant 0 : index
    %c0_37 = arith.constant 0 : index
    %40 = vector.load %arg10[%c0_34, %c1_35, %c0_36, %c0_37] : memref<2x2x32x1xf32, #tpu.memory_space<vmem>>, vector<1x1x32x1xf32>
    %41 = vector.shape_cast %40 : vector<1x1x32x1xf32> to vector<32x1xf32>
    %c0_38 = arith.constant 0 : index
    %c0_39 = arith.constant 0 : index
    %c0_40 = arith.constant 0 : index
    %42 = vector.load %arg11[%c0_38, %c0_39, %c0_40] : memref<2x64x32xbf16, #tpu.memory_space<vmem>>, vector<1x64x32xbf16>
    %43 = vector.shape_cast %42 : vector<1x64x32xbf16> to vector<64x32xbf16>
    %c0_41 = arith.constant 0 : index
    %c0_42 = arith.constant 0 : index
    %c0_43 = arith.constant 0 : index
    %44 = vector.load %arg12[%c0_41, %c0_42, %c0_43] : memref<2x64x1xf32, #tpu.memory_space<vmem>>, vector<1x64x1xf32>
    %45 = vector.shape_cast %44 : vector<1x64x1xf32> to vector<64x1xf32>
    %c0_44 = arith.constant 0 : index
    %c0_45 = arith.constant 0 : index
    %c0_46 = arith.constant 0 : index
    %46 = vector.load %arg13[%c0_44, %c0_45, %c0_46] : memref<2x32x64xbf16, #tpu.memory_space<vmem>>, vector<1x32x64xbf16>
    %47 = vector.shape_cast %46 : vector<1x32x64xbf16> to vector<32x64xbf16>
    %c0_47 = arith.constant 0 : index
    %c0_48 = arith.constant 0 : index
    %c0_49 = arith.constant 0 : index
    %48 = vector.load %arg14[%c0_47, %c0_48, %c0_49] : memref<2x32x1xf32, #tpu.memory_space<vmem>>, vector<1x32x1xf32>
    %49 = vector.shape_cast %48 : vector<1x32x1xf32> to vector<32x1xf32>
    %50 = arith.truncf %25 : vector<32x16xf32> to vector<32x16xbf16>
    %cst_50 = arith.constant dense<0.000000e+00> : vector<96x16xf32>
    %51 = tpu.matmul %27, %50, %cst_50 {dimension_numbers = #tpu.dot_dimension_numbers<[1], [0], [0], [1], [0, 0, 1, 1], [], []>} : vector<96x32xbf16>, vector<32x16xbf16>, vector<96x16xf32> -> vector<96x16xf32>
    %52 = vector.broadcast %29 : vector<96x1xf32> to vector<96x16xf32>
    %53 = arith.addf %51, %52 : vector<96x16xf32>
    %54 = vector.extract_strided_slice %53 {offsets = [0, 0], sizes = [32, 16], strides = [1, 1]} : vector<96x16xf32> to vector<32x16xf32>
    %55 = vector.extract_strided_slice %53 {offsets = [32, 0], sizes = [32, 16], strides = [1, 1]} : vector<96x16xf32> to vector<32x16xf32>
    %56 = vector.extract_strided_slice %53 {offsets = [64, 0], sizes = [32, 16], strides = [1, 1]} : vector<96x16xf32> to vector<32x16xf32>
    %57 = vector.shape_cast %55 : vector<32x16xf32> to vector<4x8x16xf32>
    %58 = arith.truncf %57 : vector<4x8x16xf32> to vector<4x8x16xbf16>
    %59 = vector.shape_cast %56 : vector<32x16xf32> to vector<4x8x16xf32>
    %60 = arith.truncf %59 : vector<4x8x16xf32> to vector<4x8x16xbf16>
    %61 = vector.extract_strided_slice %54 {offsets = [0, 0], sizes = [8, 16], strides = [1, 1]} : vector<32x16xf32> to vector<8x16xf32>
    %62 = tpu.transpose %61, [1, 0] : vector<8x16xf32> -> vector<16x8xf32>
    %63 = vector.extract_strided_slice %54 {offsets = [8, 0], sizes = [8, 16], strides = [1, 1]} : vector<32x16xf32> to vector<8x16xf32>
    %64 = tpu.transpose %63, [1, 0] : vector<8x16xf32> -> vector<16x8xf32>
    %65 = vector.extract_strided_slice %54 {offsets = [16, 0], sizes = [8, 16], strides = [1, 1]} : vector<32x16xf32> to vector<8x16xf32>
    %66 = tpu.transpose %65, [1, 0] : vector<8x16xf32> -> vector<16x8xf32>
    %67 = vector.extract_strided_slice %54 {offsets = [24, 0], sizes = [8, 16], strides = [1, 1]} : vector<32x16xf32> to vector<8x16xf32>
    %68 = tpu.transpose %67, [1, 0] : vector<8x16xf32> -> vector<16x8xf32>
    %69 = vector.shape_cast %62 : vector<16x8xf32> to vector<1x16x8xf32>
    %70 = vector.shape_cast %64 : vector<16x8xf32> to vector<1x16x8xf32>
    %71 = vector.shape_cast %66 : vector<16x8xf32> to vector<1x16x8xf32>
    %72 = vector.shape_cast %68 : vector<16x8xf32> to vector<1x16x8xf32>
    %73 = tpu.concatenate %69, %70, %71, %72 in 0 : vector<1x16x8xf32>, vector<1x16x8xf32>, vector<1x16x8xf32>, vector<1x16x8xf32> -> vector<4x16x8xf32>
    %74 = arith.truncf %73 : vector<4x16x8xf32> to vector<4x16x8xbf16>
    "tpu.trace_start"() <{level = 10 : i32, message = "hmd,hdn->hmn"}> : () -> ()
    %cst_51 = arith.constant dense<0.000000e+00> : vector<4x16x16xf32>
    %75 = tpu.matmul %74, %58, %cst_51 {dimension_numbers = #tpu.dot_dimension_numbers<[2], [1], [1], [2], [0, 0, 0, 1, 1, 2], [0], [0]>} : vector<4x16x8xbf16>, vector<4x8x16xbf16>, vector<4x16x16xf32> -> vector<4x16x16xf32>
    "tpu.trace_stop"() : () -> ()
    %cst_52 = arith.constant 0.353553385 : f32
    %76 = vector.broadcast %cst_52 : f32 to vector<4x16x16xf32>
    %77 = arith.mulf %75, %76 : vector<4x16x16xf32>
    %78 = vector.shape_cast %1 : vector<16x16xf32> to vector<1x16x16xf32>
    %79 = vector.broadcast %78 : vector<1x16x16xf32> to vector<4x16x16xf32>
    %80 = arith.addf %77, %79 : vector<4x16x16xf32>
    %cst_53 = arith.constant dense<0xFF800000> : vector<4x16xf32>
    %81 = vector.multi_reduction <maximumf>, %80, %cst_53 [2] : vector<4x16x16xf32> to vector<4x16xf32>
    %82 = vector.shape_cast %81 : vector<4x16xf32> to vector<4x16x1xf32>
    %83 = vector.broadcast %82 : vector<4x16x1xf32> to vector<4x16x16xf32>
    %84 = arith.subf %80, %83 : vector<4x16x16xf32>
    %85 = math.exp %84 : vector<4x16x16xf32>
    %cst_54 = arith.constant dense<0.000000e+00> : vector<4x16xf32>
    %86 = vector.multi_reduction <add>, %85, %cst_54 [2] : vector<4x16x16xf32> to vector<4x16xf32>
    %87 = vector.shape_cast %86 : vector<4x16xf32> to vector<4x16x1xf32>
    %88 = tpu.reciprocal %87 {approx = true} : vector<4x16x1xf32> -> vector<4x16x1xf32>
    %89 = vector.broadcast %88 : vector<4x16x1xf32> to vector<4x16x16xf32>
    %90 = arith.mulf %85, %89 : vector<4x16x16xf32>
    %91 = arith.truncf %90 : vector<4x16x16xf32> to vector<4x16x16xbf16>
    "tpu.trace_start"() <{level = 10 : i32, message = "hdn,hmn->hdm"}> : () -> ()
    %cst_55 = arith.constant dense<0.000000e+00> : vector<4x8x16xf32>
    %92 = tpu.matmul %60, %91, %cst_55 {dimension_numbers = #tpu.dot_dimension_numbers<[2], [2], [1], [1], [0, 0, 0, 1, 1, 1], [0], [0]>} : vector<4x8x16xbf16>, vector<4x16x16xbf16>, vector<4x8x16xf32> -> vector<4x8x16xf32>
    "tpu.trace_stop"() : () -> ()
    %93 = vector.shape_cast %92 : vector<4x8x16xf32> to vector<32x16xf32>
    %94 = arith.truncf %93 : vector<32x16xf32> to vector<32x16xbf16>
    %cst_56 = arith.constant dense<0.000000e+00> : vector<32x16xf32>
    %95 = tpu.matmul %31, %94, %cst_56 {dimension_numbers = #tpu.dot_dimension_numbers<[1], [0], [0], [1], [0, 0, 1, 1], [], []>} : vector<32x32xbf16>, vector<32x16xbf16>, vector<32x16xf32> -> vector<32x16xf32>
    %96 = vector.broadcast %33 : vector<32x1xf32> to vector<32x16xf32>
    %97 = arith.addf %95, %96 : vector<32x16xf32>
    %98 = arith.addf %25, %97 : vector<32x16xf32>
    %cst_57 = arith.constant dense<0.000000e+00> : vector<16xf32>
    %99 = vector.multi_reduction <add>, %98, %cst_57 [0] : vector<32x16xf32> to vector<16xf32>
    %100 = vector.shape_cast %99 : vector<16xf32> to vector<1x16xf32>
    %cst_58 = arith.constant 3.200000e+01 : f32
    %101 = vector.broadcast %cst_58 : f32 to vector<1x16xf32>
    %102 = arith.divf %100, %101 : vector<1x16xf32>
    %103 = arith.mulf %98, %98 : vector<32x16xf32>
    %cst_59 = arith.constant dense<0.000000e+00> : vector<16xf32>
    %104 = vector.multi_reduction <add>, %103, %cst_59 [0] : vector<32x16xf32> to vector<16xf32>
    %105 = vector.shape_cast %104 : vector<16xf32> to vector<1x16xf32>
    %cst_60 = arith.constant 3.200000e+01 : f32
    %106 = vector.broadcast %cst_60 : f32 to vector<1x16xf32>
    %107 = arith.divf %105, %106 : vector<1x16xf32>
    %108 = arith.mulf %102, %102 : vector<1x16xf32>
    %109 = arith.subf %107, %108 : vector<1x16xf32>
    %110 = vector.broadcast %102 : vector<1x16xf32> to vector<32x16xf32>
    %111 = arith.subf %98, %110 : vector<32x16xf32>
    %cst_61 = arith.constant 9.99999974E-6 : f32
    %112 = vector.broadcast %cst_61 : f32 to vector<1x16xf32>
    %113 = arith.addf %109, %112 : vector<1x16xf32>
    %114 = math.rsqrt %113 : vector<1x16xf32>
    %115 = vector.broadcast %114 : vector<1x16xf32> to vector<32x16xf32>
    %116 = arith.mulf %111, %115 : vector<32x16xf32>
    %117 = vector.broadcast %35 : vector<32x1xf32> to vector<32x16xf32>
    %118 = arith.mulf %116, %117 : vector<32x16xf32>
    %119 = vector.broadcast %37 : vector<32x1xf32> to vector<32x16xf32>
    %120 = arith.addf %118, %119 : vector<32x16xf32>
    %121 = arith.truncf %120 : vector<32x16xf32> to vector<32x16xbf16>
    %cst_62 = arith.constant dense<0.000000e+00> : vector<64x16xf32>
    %122 = tpu.matmul %43, %121, %cst_62 {dimension_numbers = #tpu.dot_dimension_numbers<[1], [0], [0], [1], [0, 0, 1, 1], [], []>} : vector<64x32xbf16>, vector<32x16xbf16>, vector<64x16xf32> -> vector<64x16xf32>
    %123 = vector.broadcast %45 : vector<64x1xf32> to vector<64x16xf32>
    %124 = arith.addf %122, %123 : vector<64x16xf32>
    %cst_63 = arith.constant 5.000000e-01 : f32
    %125 = vector.broadcast %cst_63 : f32 to vector<64x16xf32>
    %126 = arith.mulf %125, %124 : vector<64x16xf32>
    %cst_64 = arith.constant 4.471500e-02 : f32
    %127 = vector.broadcast %cst_64 : f32 to vector<64x16xf32>
    %128 = arith.mulf %127, %124 : vector<64x16xf32>
    %129 = arith.mulf %128, %124 : vector<64x16xf32>
    %130 = arith.mulf %129, %124 : vector<64x16xf32>
    %131 = arith.addf %124, %130 : vector<64x16xf32>
    %cst_65 = arith.constant 0.797884583 : f32
    %132 = vector.broadcast %cst_65 : f32 to vector<64x16xf32>
    %133 = arith.mulf %132, %131 : vector<64x16xf32>
    %134 = math.tanh %133 : vector<64x16xf32>
    %cst_66 = arith.constant 1.000000e+00 : f32
    %135 = vector.broadcast %cst_66 : f32 to vector<64x16xf32>
    %136 = arith.addf %135, %134 : vector<64x16xf32>
    %137 = arith.mulf %126, %136 : vector<64x16xf32>
    %138 = arith.truncf %137 : vector<64x16xf32> to vector<64x16xbf16>
    %cst_67 = arith.constant dense<0.000000e+00> : vector<32x16xf32>
    %139 = tpu.matmul %47, %138, %cst_67 {dimension_numbers = #tpu.dot_dimension_numbers<[1], [0], [0], [1], [0, 0, 1, 1], [], []>} : vector<32x64xbf16>, vector<64x16xbf16>, vector<32x16xf32> -> vector<32x16xf32>
    %140 = vector.broadcast %49 : vector<32x1xf32> to vector<32x16xf32>
    %141 = arith.addf %139, %140 : vector<32x16xf32>
    %142 = arith.addf %120, %141 : vector<32x16xf32>
    %cst_68 = arith.constant dense<0.000000e+00> : vector<16xf32>
    %143 = vector.multi_reduction <add>, %142, %cst_68 [0] : vector<32x16xf32> to vector<16xf32>
    %144 = vector.shape_cast %143 : vector<16xf32> to vector<1x16xf32>
    %cst_69 = arith.constant 3.200000e+01 : f32
    %145 = vector.broadcast %cst_69 : f32 to vector<1x16xf32>
    %146 = arith.divf %144, %145 : vector<1x16xf32>
    %147 = arith.mulf %142, %142 : vector<32x16xf32>
    %cst_70 = arith.constant dense<0.000000e+00> : vector<16xf32>
    %148 = vector.multi_reduction <add>, %147, %cst_70 [0] : vector<32x16xf32> to vector<16xf32>
    %149 = vector.shape_cast %148 : vector<16xf32> to vector<1x16xf32>
    %cst_71 = arith.constant 3.200000e+01 : f32
    %150 = vector.broadcast %cst_71 : f32 to vector<1x16xf32>
    %151 = arith.divf %149, %150 : vector<1x16xf32>
    %152 = arith.mulf %146, %146 : vector<1x16xf32>
    %153 = arith.subf %151, %152 : vector<1x16xf32>
    %154 = vector.broadcast %146 : vector<1x16xf32> to vector<32x16xf32>
    %155 = arith.subf %142, %154 : vector<32x16xf32>
    %cst_72 = arith.constant 9.99999974E-6 : f32
    %156 = vector.broadcast %cst_72 : f32 to vector<1x16xf32>
    %157 = arith.addf %153, %156 : vector<1x16xf32>
    %158 = math.rsqrt %157 : vector<1x16xf32>
    %159 = vector.broadcast %158 : vector<1x16xf32> to vector<32x16xf32>
    %160 = arith.mulf %155, %159 : vector<32x16xf32>
    %161 = vector.broadcast %39 : vector<32x1xf32> to vector<32x16xf32>
    %162 = arith.mulf %160, %161 : vector<32x16xf32>
    %163 = vector.broadcast %41 : vector<32x1xf32> to vector<32x16xf32>
    %164 = arith.addf %162, %163 : vector<32x16xf32>
    %c1_73 = arith.constant 1 : index
    %c0_74 = arith.constant 0 : index
    %c0_75 = arith.constant 0 : index
    %165 = vector.load %arg5[%c1_73, %c0_74, %c0_75] : memref<2x96x32xbf16, #tpu.memory_space<vmem>>, vector<1x96x32xbf16>
    %166 = vector.shape_cast %165 : vector<1x96x32xbf16> to vector<96x32xbf16>
    %c1_76 = arith.constant 1 : index
    %c0_77 = arith.constant 0 : index
    %c0_78 = arith.constant 0 : index
    %167 = vector.load %arg6[%c1_76, %c0_77, %c0_78] : memref<2x96x1xf32, #tpu.memory_space<vmem>>, vector<1x96x1xf32>
    %168 = vector.shape_cast %167 : vector<1x96x1xf32> to vector<96x1xf32>
    %c1_79 = arith.constant 1 : index
    %c0_80 = arith.constant 0 : index
    %c0_81 = arith.constant 0 : index
    %169 = vector.load %arg7[%c1_79, %c0_80, %c0_81] : memref<2x32x32xbf16, #tpu.memory_space<vmem>>, vector<1x32x32xbf16>
    %170 = vector.shape_cast %169 : vector<1x32x32xbf16> to vector<32x32xbf16>
    %c1_82 = arith.constant 1 : index
    %c0_83 = arith.constant 0 : index
    %c0_84 = arith.constant 0 : index
    %171 = vector.load %arg8[%c1_82, %c0_83, %c0_84] : memref<2x32x1xf32, #tpu.memory_space<vmem>>, vector<1x32x1xf32>
    %172 = vector.shape_cast %171 : vector<1x32x1xf32> to vector<32x1xf32>
    %c1_85 = arith.constant 1 : index
    %c0_86 = arith.constant 0 : index
    %c0_87 = arith.constant 0 : index
    %c0_88 = arith.constant 0 : index
    %173 = vector.load %arg9[%c1_85, %c0_86, %c0_87, %c0_88] : memref<2x2x32x1xf32, #tpu.memory_space<vmem>>, vector<1x1x32x1xf32>
    %174 = vector.shape_cast %173 : vector<1x1x32x1xf32> to vector<32x1xf32>
    %c1_89 = arith.constant 1 : index
    %c0_90 = arith.constant 0 : index
    %c0_91 = arith.constant 0 : index
    %c0_92 = arith.constant 0 : index
    %175 = vector.load %arg10[%c1_89, %c0_90, %c0_91, %c0_92] : memref<2x2x32x1xf32, #tpu.memory_space<vmem>>, vector<1x1x32x1xf32>
    %176 = vector.shape_cast %175 : vector<1x1x32x1xf32> to vector<32x1xf32>
    %c1_93 = arith.constant 1 : index
    %c1_94 = arith.constant 1 : index
    %c0_95 = arith.constant 0 : index
    %c0_96 = arith.constant 0 : index
    %177 = vector.load %arg9[%c1_93, %c1_94, %c0_95, %c0_96] : memref<2x2x32x1xf32, #tpu.memory_space<vmem>>, vector<1x1x32x1xf32>
    %178 = vector.shape_cast %177 : vector<1x1x32x1xf32> to vector<32x1xf32>
    %c1_97 = arith.constant 1 : index
    %c1_98 = arith.constant 1 : index
    %c0_99 = arith.constant 0 : index
    %c0_100 = arith.constant 0 : index
    %179 = vector.load %arg10[%c1_97, %c1_98, %c0_99, %c0_100] : memref<2x2x32x1xf32, #tpu.memory_space<vmem>>, vector<1x1x32x1xf32>
    %180 = vector.shape_cast %179 : vector<1x1x32x1xf32> to vector<32x1xf32>
    %c1_101 = arith.constant 1 : index
    %c0_102 = arith.constant 0 : index
    %c0_103 = arith.constant 0 : index
    %181 = vector.load %arg11[%c1_101, %c0_102, %c0_103] : memref<2x64x32xbf16, #tpu.memory_space<vmem>>, vector<1x64x32xbf16>
    %182 = vector.shape_cast %181 : vector<1x64x32xbf16> to vector<64x32xbf16>
    %c1_104 = arith.constant 1 : index
    %c0_105 = arith.constant 0 : index
    %c0_106 = arith.constant 0 : index
    %183 = vector.load %arg12[%c1_104, %c0_105, %c0_106] : memref<2x64x1xf32, #tpu.memory_space<vmem>>, vector<1x64x1xf32>
    %184 = vector.shape_cast %183 : vector<1x64x1xf32> to vector<64x1xf32>
    %c1_107 = arith.constant 1 : index
    %c0_108 = arith.constant 0 : index
    %c0_109 = arith.constant 0 : index
    %185 = vector.load %arg13[%c1_107, %c0_108, %c0_109] : memref<2x32x64xbf16, #tpu.memory_space<vmem>>, vector<1x32x64xbf16>
    %186 = vector.shape_cast %185 : vector<1x32x64xbf16> to vector<32x64xbf16>
    %c1_110 = arith.constant 1 : index
    %c0_111 = arith.constant 0 : index
    %c0_112 = arith.constant 0 : index
    %187 = vector.load %arg14[%c1_110, %c0_111, %c0_112] : memref<2x32x1xf32, #tpu.memory_space<vmem>>, vector<1x32x1xf32>
    %188 = vector.shape_cast %187 : vector<1x32x1xf32> to vector<32x1xf32>
    %189 = arith.truncf %164 : vector<32x16xf32> to vector<32x16xbf16>
    %cst_113 = arith.constant dense<0.000000e+00> : vector<96x16xf32>
    %190 = tpu.matmul %166, %189, %cst_113 {dimension_numbers = #tpu.dot_dimension_numbers<[1], [0], [0], [1], [0, 0, 1, 1], [], []>} : vector<96x32xbf16>, vector<32x16xbf16>, vector<96x16xf32> -> vector<96x16xf32>
    %191 = vector.broadcast %168 : vector<96x1xf32> to vector<96x16xf32>
    %192 = arith.addf %190, %191 : vector<96x16xf32>
    %193 = vector.extract_strided_slice %192 {offsets = [0, 0], sizes = [32, 16], strides = [1, 1]} : vector<96x16xf32> to vector<32x16xf32>
    %194 = vector.extract_strided_slice %192 {offsets = [32, 0], sizes = [32, 16], strides = [1, 1]} : vector<96x16xf32> to vector<32x16xf32>
    %195 = vector.extract_strided_slice %192 {offsets = [64, 0], sizes = [32, 16], strides = [1, 1]} : vector<96x16xf32> to vector<32x16xf32>
    %196 = vector.shape_cast %194 : vector<32x16xf32> to vector<4x8x16xf32>
    %197 = arith.truncf %196 : vector<4x8x16xf32> to vector<4x8x16xbf16>
    %198 = vector.shape_cast %195 : vector<32x16xf32> to vector<4x8x16xf32>
    %199 = arith.truncf %198 : vector<4x8x16xf32> to vector<4x8x16xbf16>
    %200 = vector.extract_strided_slice %193 {offsets = [0, 0], sizes = [8, 16], strides = [1, 1]} : vector<32x16xf32> to vector<8x16xf32>
    %201 = tpu.transpose %200, [1, 0] : vector<8x16xf32> -> vector<16x8xf32>
    %202 = vector.extract_strided_slice %193 {offsets = [8, 0], sizes = [8, 16], strides = [1, 1]} : vector<32x16xf32> to vector<8x16xf32>
    %203 = tpu.transpose %202, [1, 0] : vector<8x16xf32> -> vector<16x8xf32>
    %204 = vector.extract_strided_slice %193 {offsets = [16, 0], sizes = [8, 16], strides = [1, 1]} : vector<32x16xf32> to vector<8x16xf32>
    %205 = tpu.transpose %204, [1, 0] : vector<8x16xf32> -> vector<16x8xf32>
    %206 = vector.extract_strided_slice %193 {offsets = [24, 0], sizes = [8, 16], strides = [1, 1]} : vector<32x16xf32> to vector<8x16xf32>
    %207 = tpu.transpose %206, [1, 0] : vector<8x16xf32> -> vector<16x8xf32>
    %208 = vector.shape_cast %201 : vector<16x8xf32> to vector<1x16x8xf32>
    %209 = vector.shape_cast %203 : vector<16x8xf32> to vector<1x16x8xf32>
    %210 = vector.shape_cast %205 : vector<16x8xf32> to vector<1x16x8xf32>
    %211 = vector.shape_cast %207 : vector<16x8xf32> to vector<1x16x8xf32>
    %212 = tpu.concatenate %208, %209, %210, %211 in 0 : vector<1x16x8xf32>, vector<1x16x8xf32>, vector<1x16x8xf32>, vector<1x16x8xf32> -> vector<4x16x8xf32>
    %213 = arith.truncf %212 : vector<4x16x8xf32> to vector<4x16x8xbf16>
    "tpu.trace_start"() <{level = 10 : i32, message = "hmd,hdn->hmn"}> : () -> ()
    %cst_114 = arith.constant dense<0.000000e+00> : vector<4x16x16xf32>
    %214 = tpu.matmul %213, %197, %cst_114 {dimension_numbers = #tpu.dot_dimension_numbers<[2], [1], [1], [2], [0, 0, 0, 1, 1, 2], [0], [0]>} : vector<4x16x8xbf16>, vector<4x8x16xbf16>, vector<4x16x16xf32> -> vector<4x16x16xf32>
    "tpu.trace_stop"() : () -> ()
    %cst_115 = arith.constant 0.353553385 : f32
    %215 = vector.broadcast %cst_115 : f32 to vector<4x16x16xf32>
    %216 = arith.mulf %214, %215 : vector<4x16x16xf32>
    %217 = vector.shape_cast %1 : vector<16x16xf32> to vector<1x16x16xf32>
    %218 = vector.broadcast %217 : vector<1x16x16xf32> to vector<4x16x16xf32>
    %219 = arith.addf %216, %218 : vector<4x16x16xf32>
    %cst_116 = arith.constant dense<0xFF800000> : vector<4x16xf32>
    %220 = vector.multi_reduction <maximumf>, %219, %cst_116 [2] : vector<4x16x16xf32> to vector<4x16xf32>
    %221 = vector.shape_cast %220 : vector<4x16xf32> to vector<4x16x1xf32>
    %222 = vector.broadcast %221 : vector<4x16x1xf32> to vector<4x16x16xf32>
    %223 = arith.subf %219, %222 : vector<4x16x16xf32>
    %224 = math.exp %223 : vector<4x16x16xf32>
    %cst_117 = arith.constant dense<0.000000e+00> : vector<4x16xf32>
    %225 = vector.multi_reduction <add>, %224, %cst_117 [2] : vector<4x16x16xf32> to vector<4x16xf32>
    %226 = vector.shape_cast %225 : vector<4x16xf32> to vector<4x16x1xf32>
    %227 = tpu.reciprocal %226 {approx = true} : vector<4x16x1xf32> -> vector<4x16x1xf32>
    %228 = vector.broadcast %227 : vector<4x16x1xf32> to vector<4x16x16xf32>
    %229 = arith.mulf %224, %228 : vector<4x16x16xf32>
    %230 = arith.truncf %229 : vector<4x16x16xf32> to vector<4x16x16xbf16>
    "tpu.trace_start"() <{level = 10 : i32, message = "hdn,hmn->hdm"}> : () -> ()
    %cst_118 = arith.constant dense<0.000000e+00> : vector<4x8x16xf32>
    %231 = tpu.matmul %199, %230, %cst_118 {dimension_numbers = #tpu.dot_dimension_numbers<[2], [2], [1], [1], [0, 0, 0, 1, 1, 1], [0], [0]>} : vector<4x8x16xbf16>, vector<4x16x16xbf16>, vector<4x8x16xf32> -> vector<4x8x16xf32>
    "tpu.trace_stop"() : () -> ()
    %232 = vector.shape_cast %231 : vector<4x8x16xf32> to vector<32x16xf32>
    %233 = arith.truncf %232 : vector<32x16xf32> to vector<32x16xbf16>
    %cst_119 = arith.constant dense<0.000000e+00> : vector<32x16xf32>
    %234 = tpu.matmul %170, %233, %cst_119 {dimension_numbers = #tpu.dot_dimension_numbers<[1], [0], [0], [1], [0, 0, 1, 1], [], []>} : vector<32x32xbf16>, vector<32x16xbf16>, vector<32x16xf32> -> vector<32x16xf32>
    %235 = vector.broadcast %172 : vector<32x1xf32> to vector<32x16xf32>
    %236 = arith.addf %234, %235 : vector<32x16xf32>
    %237 = arith.addf %164, %236 : vector<32x16xf32>
    %cst_120 = arith.constant dense<0.000000e+00> : vector<16xf32>
    %238 = vector.multi_reduction <add>, %237, %cst_120 [0] : vector<32x16xf32> to vector<16xf32>
    %239 = vector.shape_cast %238 : vector<16xf32> to vector<1x16xf32>
    %cst_121 = arith.constant 3.200000e+01 : f32
    %240 = vector.broadcast %cst_121 : f32 to vector<1x16xf32>
    %241 = arith.divf %239, %240 : vector<1x16xf32>
    %242 = arith.mulf %237, %237 : vector<32x16xf32>
    %cst_122 = arith.constant dense<0.000000e+00> : vector<16xf32>
    %243 = vector.multi_reduction <add>, %242, %cst_122 [0] : vector<32x16xf32> to vector<16xf32>
    %244 = vector.shape_cast %243 : vector<16xf32> to vector<1x16xf32>
    %cst_123 = arith.constant 3.200000e+01 : f32
    %245 = vector.broadcast %cst_123 : f32 to vector<1x16xf32>
    %246 = arith.divf %244, %245 : vector<1x16xf32>
    %247 = arith.mulf %241, %241 : vector<1x16xf32>
    %248 = arith.subf %246, %247 : vector<1x16xf32>
    %249 = vector.broadcast %241 : vector<1x16xf32> to vector<32x16xf32>
    %250 = arith.subf %237, %249 : vector<32x16xf32>
    %cst_124 = arith.constant 9.99999974E-6 : f32
    %251 = vector.broadcast %cst_124 : f32 to vector<1x16xf32>
    %252 = arith.addf %248, %251 : vector<1x16xf32>
    %253 = math.rsqrt %252 : vector<1x16xf32>
    %254 = vector.broadcast %253 : vector<1x16xf32> to vector<32x16xf32>
    %255 = arith.mulf %250, %254 : vector<32x16xf32>
    %256 = vector.broadcast %174 : vector<32x1xf32> to vector<32x16xf32>
    %257 = arith.mulf %255, %256 : vector<32x16xf32>
    %258 = vector.broadcast %176 : vector<32x1xf32> to vector<32x16xf32>
    %259 = arith.addf %257, %258 : vector<32x16xf32>
    %260 = arith.truncf %259 : vector<32x16xf32> to vector<32x16xbf16>
    %cst_125 = arith.constant dense<0.000000e+00> : vector<64x16xf32>
    %261 = tpu.matmul %182, %260, %cst_125 {dimension_numbers = #tpu.dot_dimension_numbers<[1], [0], [0], [1], [0, 0, 1, 1], [], []>} : vector<64x32xbf16>, vector<32x16xbf16>, vector<64x16xf32> -> vector<64x16xf32>
    %262 = vector.broadcast %184 : vector<64x1xf32> to vector<64x16xf32>
    %263 = arith.addf %261, %262 : vector<64x16xf32>
    %cst_126 = arith.constant 5.000000e-01 : f32
    %264 = vector.broadcast %cst_126 : f32 to vector<64x16xf32>
    %265 = arith.mulf %264, %263 : vector<64x16xf32>
    %cst_127 = arith.constant 4.471500e-02 : f32
    %266 = vector.broadcast %cst_127 : f32 to vector<64x16xf32>
    %267 = arith.mulf %266, %263 : vector<64x16xf32>
    %268 = arith.mulf %267, %263 : vector<64x16xf32>
    %269 = arith.mulf %268, %263 : vector<64x16xf32>
    %270 = arith.addf %263, %269 : vector<64x16xf32>
    %cst_128 = arith.constant 0.797884583 : f32
    %271 = vector.broadcast %cst_128 : f32 to vector<64x16xf32>
    %272 = arith.mulf %271, %270 : vector<64x16xf32>
    %273 = math.tanh %272 : vector<64x16xf32>
    %cst_129 = arith.constant 1.000000e+00 : f32
    %274 = vector.broadcast %cst_129 : f32 to vector<64x16xf32>
    %275 = arith.addf %274, %273 : vector<64x16xf32>
    %276 = arith.mulf %265, %275 : vector<64x16xf32>
    %277 = arith.truncf %276 : vector<64x16xf32> to vector<64x16xbf16>
    %cst_130 = arith.constant dense<0.000000e+00> : vector<32x16xf32>
    %278 = tpu.matmul %186, %277, %cst_130 {dimension_numbers = #tpu.dot_dimension_numbers<[1], [0], [0], [1], [0, 0, 1, 1], [], []>} : vector<32x64xbf16>, vector<64x16xbf16>, vector<32x16xf32> -> vector<32x16xf32>
    %279 = vector.broadcast %188 : vector<32x1xf32> to vector<32x16xf32>
    %280 = arith.addf %278, %279 : vector<32x16xf32>
    %281 = arith.addf %259, %280 : vector<32x16xf32>
    %cst_131 = arith.constant dense<0.000000e+00> : vector<16xf32>
    %282 = vector.multi_reduction <add>, %281, %cst_131 [0] : vector<32x16xf32> to vector<16xf32>
    %283 = vector.shape_cast %282 : vector<16xf32> to vector<1x16xf32>
    %cst_132 = arith.constant 3.200000e+01 : f32
    %284 = vector.broadcast %cst_132 : f32 to vector<1x16xf32>
    %285 = arith.divf %283, %284 : vector<1x16xf32>
    %286 = arith.mulf %281, %281 : vector<32x16xf32>
    %cst_133 = arith.constant dense<0.000000e+00> : vector<16xf32>
    %287 = vector.multi_reduction <add>, %286, %cst_133 [0] : vector<32x16xf32> to vector<16xf32>
    %288 = vector.shape_cast %287 : vector<16xf32> to vector<1x16xf32>
    %cst_134 = arith.constant 3.200000e+01 : f32
    %289 = vector.broadcast %cst_134 : f32 to vector<1x16xf32>
    %290 = arith.divf %288, %289 : vector<1x16xf32>
    %291 = arith.mulf %285, %285 : vector<1x16xf32>
    %292 = arith.subf %290, %291 : vector<1x16xf32>
    %293 = vector.broadcast %285 : vector<1x16xf32> to vector<32x16xf32>
    %294 = arith.subf %281, %293 : vector<32x16xf32>
    %cst_135 = arith.constant 9.99999974E-6 : f32
    %295 = vector.broadcast %cst_135 : f32 to vector<1x16xf32>
    %296 = arith.addf %292, %295 : vector<1x16xf32>
    %297 = math.rsqrt %296 : vector<1x16xf32>
    %298 = vector.broadcast %297 : vector<1x16xf32> to vector<32x16xf32>
    %299 = arith.mulf %294, %298 : vector<32x16xf32>
    %300 = vector.broadcast %178 : vector<32x1xf32> to vector<32x16xf32>
    %301 = arith.mulf %299, %300 : vector<32x16xf32>
    %302 = vector.broadcast %180 : vector<32x1xf32> to vector<32x16xf32>
    %303 = arith.addf %301, %302 : vector<32x16xf32>
    %304 = tpu.transpose %303, [1, 0] : vector<32x16xf32> -> vector<16x32xf32>
    %305 = vector.shape_cast %304 : vector<16x32xf32> to vector<2x8x32xf32>
    %c0_136 = arith.constant 0 : index
    %c0_137 = arith.constant 0 : index
    %c0_138 = arith.constant 0 : index
    %306 = vector.load %arg2[%c0_136, %c0_137, %c0_138] : memref<2x8x1xf32, #tpu.memory_space<vmem>>, vector<2x8x1xf32>
    %307 = vector.broadcast %306 : vector<2x8x1xf32> to vector<2x8x32xf32>
    %308 = arith.mulf %305, %307 : vector<2x8x32xf32>
    %cst_139 = arith.constant dense<0.000000e+00> : vector<2x32xf32>
    %309 = vector.multi_reduction <add>, %308, %cst_139 [1] : vector<2x8x32xf32> to vector<2x32xf32>
    %cst_140 = arith.constant dense<0.000000e+00> : vector<2x1xf32>
    %310 = vector.multi_reduction <add>, %306, %cst_140 [1] : vector<2x8x1xf32> to vector<2x1xf32>
    %cst_141 = arith.constant 9.99999971E-10 : f32
    %311 = vector.broadcast %cst_141 : f32 to vector<2x1xf32>
    %312 = arith.maximumf %310, %311 : vector<2x1xf32>
    %313 = tpu.reciprocal %312 {approx = true} : vector<2x1xf32> -> vector<2x1xf32>
    %314 = vector.broadcast %313 : vector<2x1xf32> to vector<2x32xf32>
    %315 = arith.mulf %309, %314 : vector<2x32xf32>
    %c0_142 = arith.constant 0 : index
    %c0_143 = arith.constant 0 : index
    %316 = vector.load %arg15[%c0_142, %c0_143] : memref<2x32xf32, #tpu.memory_space<vmem>>, vector<2x32xf32>
    tpu.vector_store %arg15[%c0_142, %c0_143], %315 {strides = array<i32>} : memref<2x32xf32, #tpu.memory_space<vmem>>, vector<2x32xf32>,
    return
  }
}

</mosaic_0001>

<bundles_post_ra>
// kernel: roberta_forward.1
= control target key start
LH: loop header
LB: loop body
LE: loop exit
PB: predicated region body
PF: predicated region fallthrough
CT: control target
= control target key end

     0   :  { %v3090_v3 = vmov 0   ;;  %s4006_s0 = inlined_call_operand.vmem [shape: f32[32,16], index: 0, kind: input, shape index: {}]   ;;  %s4007_s1 = inlined_call_operand.vmem [shape: f32[16,16], index: 1, kind: input, shape index: {}]   ;;  %s4008_s2 = inlined_call_operand.vmem [shape: f32[2,8,1], index: 2, kind: input, shape index: {}]   ;;  %s4009_s3 = inlined_call_operand.vmem [shape: f32[32,1], index: 3, kind: input, shape index: {}]   ;;  %s4010_s4 = inlined_call_operand.vmem [shape: f32[32,1], index: 4, kind: input, shape index: {}]   ;;  %s4011_s5 = inlined_call_operand.vmem [shape: bf16[2,96,32], index: 5, kind: input, shape index: {}]   ;;  %s4012_s6 = inlined_call_operand.vmem [shape: f32[2,96,1], index: 6, kind: input, shape index: {}]   ;;  %s4013_s7 = inlined_call_operand.vmem [shape: bf16[2,32,32], index: 7, kind: input, shape index: {}]   ;;  %s4014_s8 = inlined_call_operand.vmem [shape: f32[2,32,1], index: 8, kind: input, shape index: {}]   ;;  %s4015_s9 = inlined_call_operand.vmem [shape: f32[2,2,32,1], index: 9, kind: input, shape index: {}]   ;;  %s4016_s10 = inlined_call_operand.vmem [shape: f32[2,2,32,1], index: 10, kind: input, shape index: {}]   ;;  %s4017_s11 = inlined_call_operand.vmem [shape: bf16[2,64,32], index: 11, kind: input, shape index: {}]   ;;  %s4018_s12 = inlined_call_operand.vmem [shape: f32[2,64,1], index: 12, kind: input, shape index: {}]   ;;  %s4019_s13 = inlined_call_operand.vmem [shape: bf16[2,32,64], index: 13, kind: input, shape index: {}]   ;;  %s4020_s14 = inlined_call_operand.vmem [shape: f32[2,32,1], index: 14, kind: input, shape index: {}]   ;;  %s4021_s15 = inlined_call_operand.hbm [shape: f32[2,32], index: 15, kind: output, shape index: {}]  }
   0x1   :  { %v64_v0 = vld [vmem:[%s4010_s4 + $0x10] sm:$0xff]  ;;  %v58_v2 = vld [vmem:[%s4009_s3] sm:$0xff]  ;;  %2925 = vset.pattern.permute.xlu2 %v3090_v3  ;;  %2924 = vset.pattern.permute.xlu1 %v3090_v3 }
   0x2   :  { %v60_v1 = vld [vmem:[%s4009_s3 + $0x10] sm:$0xff]  ;;  %2923 = vset.pattern.permute.xlu0 %v3090_v3  ;;  %163 = vperm.xlu1 %2924, %v64_v0  }
   0x3   :  { %139 = vperm.xlu0 %2923, %v60_v1   ;;  %129 = vperm.xlu2 %2925, %v58_v2  }
   0x4   :  { %20 = vsyncpa [#allocation3], 0  ;;  %v65_v4 = vld [vmem:[%s4010_s4 + $0x18] sm:$0xff]  ;;  %v59_v6 = vld [vmem:[%s4009_s3 + $0x8] sm:$0xff]  ;;  %vm66_vm0 = vcmask 130048   ;;  %v3091_v35 = vmov 32.0  }
   0x5   :  { %v61_v5 = vld [vmem:[%s4009_s3 + $0x18] sm:$0xff]  ;;  %v63_v7 = vld [vmem:[%s4010_s4 + $0x8] sm:$0xff]  ;;  %v62_v8 = vld [vmem:[%s4010_s4] sm:$0xff]  ;;  %2950 = vrcp.f32 %v3091_v35  ;;  %vm341_vm5 = vcmask 261120   ;;  %vm552_vm6 = vcmask 1043456   ;;  %vm548_vm7 = vcmask 64512  }
   0x6   :  { %v187_v9 = vld [vmem:[%s4012_s6] sm:$0xff]  ;;  %v188_v10 = vld [vmem:[%s4012_s6 + $0x8] sm:$0xff]  ;;  %v189_v12 = vld [vmem:[%s4012_s6 + $0x10] sm:$0xff]  ;;  %vm1224_vm11 = vcmask 523264   ;;  %vm2601_vm15 = vcmask 7168   ;;  %s2646_s17 = sshll.u32 %s4021_s15, 4  ;;  %s2647_s17 = int_to_ptr.hbm [resolvable:$true] %s2646_s17 }
   0x7   :  { %v191_v11 = vld [vmem:[%s4012_s6 + $0x20] sm:$0xff]  ;;  %v192_v13 = vld [vmem:[%s4012_s6 + $0x28] sm:$0xff]  ;;  %v190_v14 = vld [vmem:[%s4012_s6 + $0x18] sm:$0xff] }
   0x8   :  { %v193_v15 = vld [vmem:[%s4012_s6 + $0x30] sm:$0xff]  ;;  %v3221_v16 = vld [vmem:[%s4006_s0] sm:$0xff]  ;;  %v3226_v17 = vld [vmem:[%s4006_s0 + $0x8] sm:$0xff] }
   0x9   :  { %v67_v18 = vsel %vm66_vm0, %v3221_v16, 0.0  ;;  %v68_v19 = vsel %vm66_vm0, %v3226_v17, 0.0  ;;  %v88_v20 = vmul.f32 %v3221_v16, %v3221_v16  ;;  %v89_v21 = vmul.f32 %v3226_v17, %v3226_v17  ;;  %v194_v22 = vld [vmem:[%s4012_s6 + $0x38] sm:$0xff]  ;;  %v54_v23 = vld [vmem:[%s4006_s0 + $0x10] sm:$0xff] }
   0xa   :  { %168 = vperm.xlu1 %2924, %v65_v4   ;;  %v69_v24 = vadd.f32 %v68_v19, %v67_v18  ;;  %v70_v25 = vsel %vm66_vm0, %v54_v23, 0.0  ;;  %v90_v26 = vmul.f32 %v54_v23, %v54_v23  ;;  %v55_v29 = vld [vmem:[%s4006_s0 + $0x18] sm:$0xff] }
   0xb   :  { %144 = vperm.xlu0 %2923, %v61_v5   ;;  %134 = vperm.xlu2 %2925, %v59_v6   ;;  %v92_v27 = vsel %vm66_vm0, %v88_v20, 0.0  ;;  %v93_v28 = vsel %vm66_vm0, %v89_v21, 0.0  ;;  %v72_v32 = vsel %vm66_vm0, %v55_v29, 0.0  ;;  %v91_v33 = vmul.f32 %v55_v29, %v55_v29  ;;  %v2951_v41 = vpop.eup %2950  ;;  %v2894_v35 = vld [vmem:[%s4011_s5 + $0x18] sm:$0xff] }
   0xc   :  { %v71_v30 = vadd.f32 %v70_v25, %v69_v24  ;;  %v94_v31 = vadd.f32 %v93_v28, %v92_v27  ;;  %v95_v34 = vsel %vm66_vm0, %v90_v26, 0.0  ;;  %v81_v44 = vmul.f32 32.0, %v2951_v41 }
   0xd   :  { %v97_v38 = vsel %vm66_vm0, %v91_v33, 0.0  ;;  %vm85_vm1 = vweird.f32 %v2951_v41  ;;  %v2892_v33 = vld [vmem:[%s4011_s5 + $0x8] sm:$0xff] }
   0xe   :  { %v73_v36 = vadd.f32 %v72_v32, %v71_v30  ;;  %v96_v37 = vadd.f32 %v95_v34, %v94_v31  ;;  %v82_v47 = vsub.f32 1.0, %v81_v44  ;;  %v2891_v32 = vld [vmem:[%s4011_s5] sm:$0xff]  ;;  %v2893_v34 = vld [vmem:[%s4011_s5 + $0x10] sm:$0xff] }
  0x10   :  { %v74_v39 = vrot.slane %v73_v36, 4  ;;  %v98_v40 = vadd.f32 %v97_v38, %v96_v37  ;;  %v83_v50 = vmul.f32 %v2951_v41, %v82_v47 }
  0x12   :  { %158 = vperm.xlu1 %2924, %v63_v7   ;;  %v75_v42 = vadd.f32 %v74_v39, %v73_v36  ;;  %v99_v43 = vrot.slane %v98_v40, 4  ;;  %v84_v53 = vadd.f32 %v2951_v41, %v83_v50 }
  0x13   :  { %153 = vperm.xlu0 %2923, %v62_v8   ;;  %253 = vperm.xlu2 %2925, %v187_v9  }
  0x14   :  { %v76_v45 = vrot.slane %v75_v42, 2  ;;  %v100_v46 = vadd.f32 %v99_v43, %v98_v40  ;;  %v3251_v56 = vsel %vm85_vm1, %v2951_v41, %v84_v53 }
  0x16   :  { %v77_v48 = vadd.f32 %v76_v45, %v75_v42  ;;  %v101_v49 = vrot.slane %v100_v46, 2 }
  0x18   :  { %v78_v51 = vrot.slane %v77_v48, 1  ;;  %v102_v52 = vadd.f32 %v101_v49, %v100_v46 }
  0x1a   :  { %258 = vperm.xlu1 %2924, %v188_v10   ;;  %v79_v54 = vadd.f32 %v78_v51, %v77_v48  ;;  %v103_v55 = vrot.slane %v102_v52, 1 }
  0x1b   :  { %273 = vperm.xlu0 %2923, %v191_v11   ;;  %263 = vperm.xlu2 %2925, %v189_v12  }
  0x1c   :  { %v87_v57 = vmul.f32 %v3251_v56, %v79_v54  ;;  %v104_v58 = vadd.f32 %v103_v55, %v102_v52 }
  0x1e   :  { %v105_v59 = vmul.f32 %v104_v58, %v3251_v56  ;;  %v106_v60 = vmul.f32 %v87_v57, %v87_v57  ;;  %v110_v6 = vsub.f32 %v54_v23, %v87_v57  ;;  %v111_v9 = vsub.f32 %v55_v29, %v87_v57 }
  0x20   :  { %v107_v61 = vsub.f32 %v105_v59, %v106_v60 }
  0x22   :  { %278 = vperm.xlu1 %2924, %v192_v13   ;;  %v112_v62 = vadd.f32 1e-05, %v107_v61  ;;  %v109_v13 = vsub.f32 %v3226_v17, %v87_v57 }
  0x23   :  { %268 = vperm.xlu0 %2923, %v190_v14   ;;  %283 = vperm.xlu2 %2925, %v193_v15   ;;  %v108_v14 = vsub.f32 %v3221_v16, %v87_v57 }
  0x24   :  { %2952 = vrsqrt.f32 %v112_v62  ;;  %vm119_vm2 = vweird.f32 %v112_v62 }
  0x2a   :  { %v2953_v63 = vpop.eup %2952 }
  0x2b   :  { %288 = vperm.xlu0 %2923, %v194_v22   ;;  %v114_v0 = vmul.f32 %v2953_v63, %v112_v62  ;;  %vm120_vm3 = vweird.f32 %v2953_v63 }
  0x2c   :  { %vm121_vm4 = vmor %vm119_vm2, %vm120_vm3 }
  0x2d   :  { %v115_v1 = vmul.f32 %v2953_v63, %v114_v0 }
  0x2f   :  { %v116_v2 = vmul.f32 0.5, %v115_v1 }
  0x31   :  { %v117_v3 = vsub.f32 1.5, %v116_v2 }
  0x33   :  { %v118_v4 = vmul.f32 %v2953_v63, %v117_v3 }
  0x35   :  { %v122_v7 = vsel %vm121_vm4, %v2953_v63, %v118_v4 }
  0x36   :  { %v125_v11 = vmul.f32 %v122_v7, %v110_v6  ;;  %v126_v12 = vmul.f32 %v122_v7, %v111_v9  ;;  %v124_v21 = vmul.f32 %v122_v7, %v109_v13  ;;  %v123_v22 = vmul.f32 %v122_v7, %v108_v14  ;;  %v2895_v6 = vld [vmem:[%s4011_s5 + $0x20] sm:$0xff]  ;;  %v2896_v7 = vld [vmem:[%s4011_s5 + $0x28] sm:$0xff] }
  0x5d   :  { %v130_v10 = vpop.permute.xlu2 %129 }
  0x5e   :  { %v147_v28 = vmul.f32 %v130_v10, %v123_v22 }
  0x65   :  { %v135_v23 = vpop.permute.xlu2 %134 }
  0x66   :  { %v148_v27 = vmul.f32 %v135_v23, %v124_v21 }
  0x6d   :  { %v254_v36 = vpop.permute.xlu2 %253 }
  0x74   :  { %v164_v5 = vpop.permute.xlu1 %163 }
  0x75   :  { %v140_v8 = vpop.permute.xlu0 %139  ;;  %v264_v41 = vpop.permute.xlu2 %263 }
  0x76   :  { %v149_v15 = vmul.f32 %v140_v8, %v125_v11 }
  0x78   :  { %v3257_v24 = vadd.f32 %v164_v5, %v149_v15 }
  0x7c   :  { %v169_v18 = vpop.permute.xlu1 %168 }
  0x7d   :  { %v145_v19 = vpop.permute.xlu0 %144  ;;  %v284_v60 = vpop.permute.xlu2 %283 }
  0x7e   :  { %v150_v20 = vmul.f32 %v145_v19, %v126_v12 }
  0x80   :  { %v3259_v25 = vadd.f32 %v169_v18, %v150_v20 }
  0x82   :  { %v250_v26 = vpack.c.bf16 %v3259_v25, %v3257_v24 }
  0x84   :  { %366 = vmatpush.bf16.msra.mxu0 %v250_v26  ;;  %v159_v17 = vpop.permute.xlu1 %158 }
  0x85   :  { %v3263_v29 = vadd.f32 %v159_v17, %v148_v27  ;;  %v154_v16 = vpop.permute.xlu0 %153 }
  0x86   :  { %v3265_v30 = vadd.f32 %v154_v16, %v147_v28 }
  0x88   :  { %v249_v31 = vpack.c.bf16 %v3263_v29, %v3265_v30 }
  0x8a   :  { %367 = vmatpush.bf16.msra.mxu0 %v249_v31 }
  0x8c   :  { %v259_v42 = vpop.permute.xlu1 %258 }
  0x8d   :  { %2687 = vmatmul.msk.bf16.vlgmr.msra.gmra.mxu0 %vm341_vm5, %v2891_v32  ;;  %v274_v40 = vpop.permute.xlu0 %273 }
  0x94   :  { %v279_v54 = vpop.permute.xlu1 %278 }
  0x95   :  { %v269_v47 = vpop.permute.xlu0 %268 }
  0x9d   :  { %2688 = vmatmul.msk.bf16.gmra.mxu0 %vm341_vm5, %v2892_v33  ;;  %v289_v1 = vpop.permute.xlu0 %288 }
  0xad   :  { %2689 = vmatmul.msk.bf16.gmra.mxu0 %vm341_vm5, %v2893_v34 }
  0xbd   :  { %2690 = vmatmul.msk.bf16.gmra.mxu0 %vm341_vm5, %v2894_v35 }
  0xcd   :  { %2691 = vmatmul.msk.bf16.gmra.mxu0 %vm341_vm5, %v2895_v6 }
  0xdd   :  { %2692 = vmatmul.msk.bf16.gmra.mxu0 %vm341_vm5, %v2896_v7 }
 0x10a   :  { %v369_v37 = vpop.f32.mrf.mxu0 }
 0x10b   :  { %v370_v38 = vadd.f32 %v369_v37, %v254_v36 }
 0x10d   :  { %407 = vxpose.xlu1.b32.start.end [1/1] (short) (narrow) %v370_v38, 16 }
 0x112   :  { %v371_v39 = vpop.f32.mrf.mxu0 }
 0x113   :  { %v372_v44 = vadd.f32 %v371_v39, %v259_v42 }
 0x11a   :  { %v374_v43 = vpop.f32.mrf.mxu0 }
 0x11b   :  { %v375_v45 = vadd.f32 %v374_v43, %v264_v41 }
 0x11d   :  { %v2926_v46 = vpack.i.bf16 %v375_v45, %v372_v44 }
 0x11f   :  { %2927 = vxpose.xlu2.b32.start.end [1/1] (short) (narrow) %v2926_v46, 16  ;;  %v56_v46 = vld [vmem:[%s4007_s1] sm:$0xff] }
 0x122   :  { %v376_v48 = vpop.f32.mrf.mxu0 }
 0x123   :  { %v377_v49 = vadd.f32 %v376_v48, %v269_v47 }
 0x125   :  { %503 = vxpose.xlu0.b32.start.end [1/1] (short) (narrow) %v377_v49, 16 }
 0x12a   :  { %v379_v50 = vpop.f32.mrf.mxu0 }
 0x12b   :  { %v380_v51 = vadd.f32 %v379_v50, %v274_v40 }
 0x12d   :  { %v399_v52 = vpack.c.bf16 %v380_v51, %v380_v51 }
 0x12f   :  { %v554_v53 = vsel %vm552_vm6, %v399_v52, 0  ;;  %v57_v52 = vld [vmem:[%s4007_s1 + $0x8] sm:$0xff] }
 0x130   :  { %563 = vmatpush.bf16.msra.mxu3 %v554_v53 }
 0x132   :  { %v381_v55 = vpop.f32.mrf.mxu0 }
 0x133   :  { %v382_v57 = vadd.f32 %v381_v55, %v279_v54 }
 0x135   :  { %v400_v58 = vpack.c.bf16 %v382_v57, %v382_v57 }
 0x137   :  { %v579_v59 = vsel %vm552_vm6, %v400_v58, 0 }
 0x138   :  { %588 = vmatpush.bf16.msra.mxu2 %v579_v59 }
 0x13a   :  { %v384_v61 = vpop.f32.mrf.mxu0 }
 0x13b   :  { %v385_v62 = vadd.f32 %v384_v61, %v284_v60 }
 0x13d   :  { %v401_v63 = vpack.c.bf16 %v385_v62, %v385_v62 }
 0x13f   :  { %v604_v0 = vsel %vm552_vm6, %v401_v63, 0 }
 0x140   :  { %613 = vmatpush.bf16.msrb.mxu3 %v604_v0 }
 0x142   :  { %v386_v2 = vpop.f32.mrf.mxu0 }
 0x143   :  { %v387_v3 = vadd.f32 %v386_v2, %v289_v1 }
 0x145   :  { %v402_v4 = vpack.c.bf16 %v387_v3, %v387_v3 }
 0x147   :  { %v629_v5 = vsel %vm552_vm6, %v402_v4, 0 }
 0x148   :  { %638 = vmatpush.bf16.msrb.mxu0 %v629_v5 }
 0x14a   :  { %v3301_v42 = vpop.f32.mrf.mxu0 }
 0x152   :  { %v3303_v43 = vpop.f32.mrf.mxu0 }
 0x15a   :  { %v3305_v44 = vpop.f32.mrf.mxu0 }
 0x162   :  { %v3311_v51 = vpop.f32.mrf.mxu0 }
 0x1b1   :  { %v423_v8 = vpop.trf.xlu1 }
 0x1b2   :  { %v535_v9 = vpack.c.bf16 %v423_v8, %v423_v8 }
 0x1b4   :  { %v545_v13 = vunpack.c.l.b16 %v535_v9 }
 0x1b8   :  { %v2928_v10 = vpop.trf.xlu2 }
 0x1b9   :  { %v424_v11 = vpop.trf.xlu1  ;;  %v2929_v15 = vunpack.i.l.bf16 %v2928_v10  ;;  %v2932_v26 = vunpack.i.h.bf16 %v2928_v10 }
 0x1ba   :  { %v536_v12 = vpack.c.bf16 %v424_v11, %v424_v11 }
 0x1bb   :  { %v537_v20 = vpack.c.bf16 %v2929_v15, %v2929_v15  ;;  %v539_v31 = vpack.c.bf16 %v2932_v26, %v2932_v26 }
 0x1bc   :  { %v546_v14 = vunpack.c.l.b16 %v536_v12 }
 0x1bd   :  { %v572_v27 = vunpack.c.l.b16 %v537_v20  ;;  %v597_v34 = vunpack.c.l.b16 %v539_v31 }
 0x1be   :  { %v547_v18 = vpack.c.b16 %v546_v14, %v545_v13 }
 0x1c0   :  { %v2933_v19 = vpop.trf.xlu2  ;;  %2693 = vmatmul.msk.bf16.vlgmr.msra.gmra.mxu3 %vm548_vm7, %v547_v18 }
 0x1c1   :  { %v2934_v21 = vunpack.i.l.bf16 %v2933_v19  ;;  %v2937_v22 = vunpack.i.h.bf16 %v2933_v19  ;;  %v195_v19 = vld [vmem:[%s4012_s6 + $0x40] sm:$0xff] }
 0x1c3   :  { %v538_v23 = vpack.c.bf16 %v2934_v21, %v2934_v21  ;;  %v540_v17 = vpack.c.bf16 %v2937_v22, %v2937_v22 }
 0x1c5   :  { %v573_v28 = vunpack.c.l.b16 %v538_v23  ;;  %v598_v33 = vunpack.c.l.b16 %v540_v17 }
 0x1c7   :  { %v574_v16 = vpack.c.b16 %v573_v28, %v572_v27  ;;  %v599_v36 = vpack.c.b16 %v598_v33, %v597_v34 }
 0x1c9   :  { %v519_v32 = vpop.trf.xlu0  ;;  %2694 = vmatmul.msk.bf16.vlgmr.msra.gmra.mxu2 %vm548_vm7, %v574_v16 }
 0x1ca   :  { %v541_v35 = vpack.c.bf16 %v519_v32, %v519_v32 }
 0x1cc   :  { %v622_v38 = vunpack.c.l.b16 %v541_v35 }
 0x1d0   :  { %2695 = vmatmul.msk.bf16.vlgmr.msrb.gmra.mxu3 %vm548_vm7, %v599_v36 }
 0x1d1   :  { %v520_v37 = vpop.trf.xlu0 }
 0x1d2   :  { %v542_v39 = vpack.c.bf16 %v520_v37, %v520_v37 }
 0x1d4   :  { %v623_v40 = vunpack.c.l.b16 %v542_v39 }
 0x1d6   :  { %v624_v41 = vpack.c.b16 %v623_v40, %v622_v38 }
 0x1d8   :  { %2696 = vmatmul.msk.bf16.vlgmr.msrb.gmra.mxu0 %vm548_vm7, %v624_v41 }
 0x243   :  { %v565_v45 = vpop.f32.mrf.mxu3 }
 0x244   :  { %v645_v47 = vmul.f32 0.35355338, %v565_v45 }
 0x246   :  { %v653_v48 = vadd.f32 %v645_v47, %v56_v46 }
 0x248   :  { %v661_v49 = vsel %vm66_vm0, %v653_v48, -inf }
 0x249   :  { %662 = vmax.xlane.f32.xlu2 %v661_v49 }
 0x24b   :  { %v567_v50 = vpop.f32.mrf.mxu3 }
 0x24c   :  { %v646_v53 = vmul.f32 0.35355338, %v567_v50  ;;  %v590_v54 = vpop.f32.mrf.mxu2 }
 0x24d   :  { %v647_v55 = vmul.f32 0.35355338, %v590_v54 }
 0x24e   :  { %v654_v57 = vadd.f32 %v646_v53, %v57_v52 }
 0x24f   :  { %v655_v58 = vadd.f32 %v647_v55, %v56_v46 }
 0x250   :  { %v664_v59 = vsel %vm66_vm0, %v654_v57, -inf }
 0x251   :  { %665 = vmax.xlane.f32.xlu0 %v664_v59  ;;  %v667_v60 = vsel %vm66_vm0, %v655_v58, -inf }
 0x252   :  { %668 = vmax.xlane.f32.xlu2 %v667_v60 }
 0x253   :  { %v615_v61 = vpop.f32.mrf.mxu3 }
 0x254   :  { %v649_v62 = vmul.f32 0.35355338, %v615_v61  ;;  %v592_v63 = vpop.f32.mrf.mxu2 }
 0x255   :  { %v648_v0 = vmul.f32 0.35355338, %v592_v63  ;;  %v640_v1 = vpop.f32.mrf.mxu0 }
 0x256   :  { %v657_v2 = vadd.f32 %v649_v62, %v56_v46  ;;  %v651_v4 = vmul.f32 0.35355338, %v640_v1 }
 0x257   :  { %v656_v3 = vadd.f32 %v648_v0, %v57_v52 }
 0x258   :  { %v673_v5 = vsel %vm66_vm0, %v657_v2, -inf  ;;  %v659_v9 = vadd.f32 %v651_v4, %v56_v46  ;;  %v203_v4 = vld [vmem:[%s4014_s8] sm:$0xff] }
 0x259   :  { %674 = vmax.xlane.f32.xlu1 %v673_v5  ;;  %v670_v6 = vsel %vm66_vm0, %v656_v3, -inf  ;;  %v204_v5 = vld [vmem:[%s4014_s8 + $0x8] sm:$0xff] }
 0x25a   :  { %671 = vmax.xlane.f32.xlu0 %v670_v6  ;;  %v679_v13 = vsel %vm66_vm0, %v659_v9, -inf  ;;  %v198_v6 = vld [vmem:[%s4012_s6 + $0x58] sm:$0xff] }
 0x25b   :  { %v617_v7 = vpop.f32.mrf.mxu3 }
 0x25c   :  { %v650_v8 = vmul.f32 0.35355338, %v617_v7  ;;  %v196_v7 = vld [vmem:[%s4012_s6 + $0x48] sm:$0xff] }
 0x25d   :  { %v642_v10 = vpop.f32.mrf.mxu0 }
 0x25e   :  { %v658_v11 = vadd.f32 %v650_v8, %v57_v52  ;;  %v652_v12 = vmul.f32 0.35355338, %v642_v10  ;;  %v209_v8 = vld [vmem:[%s4015_s9 + $0x10] sm:$0xff] }
 0x25f   :  { %v205_v10 = vld [vmem:[%s4014_s8 + $0x10] sm:$0xff] }
 0x260   :  { %v676_v14 = vsel %vm66_vm0, %v658_v11, -inf  ;;  %v660_v15 = vadd.f32 %v652_v12, %v57_v52  ;;  %v213_v12 = vld [vmem:[%s4016_s10 + $0x10] sm:$0xff] }
 0x261   :  { %680 = vmax.xlane.f32.xlu1 %v679_v13  ;;  %677 = vmax.xlane.f32.xlu2 %v676_v14  ;;  %v210_v13 = vld [vmem:[%s4015_s9 + $0x18] sm:$0xff]  ;;  %v211_v14 = vld [vmem:[%s4016_s10] sm:$0xff] }
 0x262   :  { %v682_v18 = vsel %vm66_vm0, %v660_v15, -inf }
 0x269   :  { %683 = vmax.xlane.f32.xlu1 %v682_v18  ;;  %v207_v18 = vld [vmem:[%s4015_s9] sm:$0xff] }
 0x282   :  { %293 = vperm.xlu1 %2924, %v195_v19   ;;  %v240_v19 = vld [vmem:[%s4018_s12 + $0x38] sm:$0xff] }
 0x2bc   :  { %v663_v20 = vpop.xlane.xlu2 %662 }
 0x2bd   :  { %v685_v21 = vsub.f32 %v653_v48, %v663_v20  ;;  %v239_v20 = vld [vmem:[%s4018_s12 + $0x30] sm:$0xff] }
 0x2bf   :  { %v693_v22 = vmul.f32 1.442695, %v685_v21  ;;  %v212_v21 = vld [vmem:[%s4016_s10 + $0x8] sm:$0xff] }
 0x2c1   :  { %2954 = vpow2.f32 %v693_v22  ;;  %v235_v22 = vld [vmem:[%s4018_s12 + $0x10] sm:$0xff] }
 0x2c4   :  { %v666_v23 = vpop.xlane.xlu0 %665 }
 0x2c5   :  { %v686_v26 = vsub.f32 %v654_v57, %v666_v23  ;;  %v669_v27 = vpop.xlane.xlu2 %668  ;;  %v238_v23 = vld [vmem:[%s4018_s12 + $0x28] sm:$0xff] }
 0x2c6   :  { %v687_v28 = vsub.f32 %v655_v58, %v669_v27  ;;  %v234_v27 = vld [vmem:[%s4018_s12 + $0x8] sm:$0xff] }
 0x2c7   :  { %v3326_v17 = vpop.eup %2954  ;;  %v695_v16 = vmul.f32 1.442695, %v686_v26  ;;  %v237_v26 = vld [vmem:[%s4018_s12 + $0x20] sm:$0xff] }
 0x2c8   :  { %v697_v31 = vmul.f32 1.442695, %v687_v28  ;;  %v709_v32 = vsel %vm66_vm0, %v3326_v17, 0.0  ;;  %v233_v28 = vld [vmem:[%s4018_s12] sm:$0xff] }
 0x2c9   :  { %2956 = vpow2.f32 %v695_v16  ;;  %710 = vadd.xlane.f32.xlu0 %v709_v32  ;;  %v236_v16 = vld [vmem:[%s4018_s12 + $0x18] sm:$0xff]  ;;  %v246_v32 = vld [vmem:[%s4020_s14 + $0x8] sm:$0xff] }
 0x2ca   :  { %2958 = vpow2.f32 %v697_v31  ;;  %v247_v31 = vld [vmem:[%s4020_s14 + $0x10] sm:$0xff] }
 0x2cc   :  { %v675_v33 = vpop.xlane.xlu1 %674 }
 0x2cd   :  { %v689_v34 = vsub.f32 %v657_v2, %v675_v33  ;;  %v672_v35 = vpop.xlane.xlu0 %671  ;;  %v197_v2 = vld [vmem:[%s4012_s6 + $0x50] sm:$0xff]  ;;  %v245_v33 = vld [vmem:[%s4020_s14] sm:$0xff] }
 0x2ce   :  { %v688_v36 = vsub.f32 %v656_v3, %v672_v35  ;;  %v2657_v35 = vld [vmem:[%s4015_s9 + $0x30] sm:$0xff] }
 0x2cf   :  { %v3330_v37 = vpop.eup %2956  ;;  %v701_v38 = vmul.f32 1.442695, %v689_v34  ;;  %v2658_v34 = vld [vmem:[%s4015_s9 + $0x38] sm:$0xff] }
 0x2d0   :  { %v3332_v39 = vpop.eup %2958  ;;  %v699_v40 = vmul.f32 1.442695, %v688_v36  ;;  %v712_v41 = vsel %vm66_vm0, %v3330_v37, 0.0  ;;  %v248_v36 = vld [vmem:[%s4020_s14 + $0x18] sm:$0xff] }
 0x2d1   :  { %2960 = vpow2.f32 %v701_v38  ;;  %713 = vadd.xlane.f32.xlu1 %v712_v41  ;;  %v715_v45 = vsel %vm66_vm0, %v3332_v39, 0.0  ;;  %v2655_v41 = vld [vmem:[%s4015_s9 + $0x20] sm:$0xff] }
 0x2d2   :  { %2962 = vpow2.f32 %v699_v40  ;;  %716 = vadd.xlane.f32.xlu2 %v715_v45  ;;  %v2662_v45 = vld [vmem:[%s4016_s10 + $0x38] sm:$0xff] }
 0x2d4   :  { %v681_v46 = vpop.xlane.xlu1 %680  ;;  %v678_v47 = vpop.xlane.xlu2 %677 }
 0x2d5   :  { %v691_v48 = vsub.f32 %v659_v9, %v681_v46  ;;  %v690_v49 = vsub.f32 %v658_v11, %v678_v47  ;;  %v206_v9 = vld [vmem:[%s4014_s8 + $0x18] sm:$0xff]  ;;  %v2661_v46 = vld [vmem:[%s4016_s10 + $0x30] sm:$0xff] }
 0x2d6   :  { %v214_v11 = vld [vmem:[%s4016_s10 + $0x18] sm:$0xff] }
 0x2d7   :  { %v3338_v50 = vpop.eup %2960  ;;  %v705_v52 = vmul.f32 1.442695, %v691_v48  ;;  %v703_v53 = vmul.f32 1.442695, %v690_v49 }
 0x2d8   :  { %v3340_v54 = vpop.eup %2962  ;;  %v721_v55 = vsel %vm66_vm0, %v3338_v50, 0.0 }
 0x2d9   :  { %2964 = vpow2.f32 %v705_v52  ;;  %v718_v57 = vsel %vm66_vm0, %v3340_v54, 0.0  ;;  %v2660_v52 = vld [vmem:[%s4016_s10 + $0x28] sm:$0xff] }
 0x2da   :  { %2966 = vpow2.f32 %v703_v53  ;;  %719 = vadd.xlane.f32.xlu0 %v718_v57  ;;  %722 = vadd.xlane.f32.xlu2 %v721_v55  ;;  %v2659_v53 = vld [vmem:[%s4016_s10 + $0x20] sm:$0xff] }
 0x2dc   :  { %v684_v58 = vpop.xlane.xlu1 %683 }
 0x2dd   :  { %v692_v59 = vsub.f32 %v660_v15, %v684_v58  ;;  %v208_v15 = vld [vmem:[%s4015_s9 + $0x8] sm:$0xff] }
 0x2de   :  { %v2656_v58 = vld [vmem:[%s4015_s9 + $0x28] sm:$0xff] }
 0x2df   :  { %v3346_v60 = vpop.eup %2964  ;;  %v707_v61 = vmul.f32 1.442695, %v692_v59 }
 0x2e0   :  { %v3348_v62 = vpop.eup %2966  ;;  %v727_v63 = vsel %vm66_vm0, %v3346_v60, 0.0 }
 0x2e1   :  { %2968 = vpow2.f32 %v707_v61  ;;  %v724_v0 = vsel %vm66_vm0, %v3348_v62, 0.0 }
 0x2e2   :  { %728 = vadd.xlane.f32.xlu2 %v727_v63  ;;  %725 = vadd.xlane.f32.xlu0 %v724_v0 }
 0x2e7   :  { %v3354_v1 = vpop.eup %2968 }
 0x2e8   :  { %v730_v3 = vsel %vm66_vm0, %v3354_v1, 0.0 }
 0x2ea   :  { %303 = vperm.xlu1 %2924, %v197_v2   ;;  %731 = vadd.xlane.f32.xlu0 %v730_v3 }
 0x2f2   :  { %857 = vperm.xlu1 %2924, %v203_v4   ;;  %v2757_v4 = vld [vmem:[%s4012_s6 + $0x80] sm:$0xff] }
 0x2f4   :  { %v294_v38 = vpop.permute.xlu1 %293 }
 0x2fa   :  { %862 = vperm.xlu1 %2924, %v204_v5   ;;  %308 = vperm.xlu2 %2925, %v198_v6  }
 0x2fe   :  { %298 = vperm.xlu0 %2923, %v196_v7  }
 0x302   :  { %979 = vperm.xlu1 %2924, %v209_v8   ;;  %872 = vperm.xlu2 %2925, %v206_v9   ;;  %v2753_v8 = vld [vmem:[%s4012_s6 + $0x60] sm:$0xff] }
 0x306   :  { %867 = vperm.xlu0 %2923, %v205_v10  }
 0x30a   :  { %1008 = vperm.xlu1 %2924, %v214_v11   ;;  %1003 = vperm.xlu2 %2925, %v213_v12  }
 0x30e   :  { %984 = vperm.xlu0 %2923, %v210_v13  }
 0x312   :  { %993 = vperm.xlu1 %2924, %v211_v14   ;;  %974 = vperm.xlu2 %2925, %v208_v15  }
 0x316   :  { %969 = vperm.xlu0 %2923, %v207_v18   ;;  %v390_v18 = vadd.f32 %v3301_v42, %v294_v38  ;;  %v2754_v42 = vld [vmem:[%s4012_s6 + $0x68] sm:$0xff] }
 0x31a   :  { %1054 = vperm.xlu1 %2924, %v240_v19   ;;  %1049 = vperm.xlu2 %2925, %v239_v20   ;;  %v2755_v19 = vld [vmem:[%s4012_s6 + $0x70] sm:$0xff] }
 0x31e   :  { %998 = vperm.xlu0 %2923, %v212_v21  }
 0x322   :  { %1029 = vperm.xlu1 %2924, %v235_v22   ;;  %1044 = vperm.xlu2 %2925, %v238_v23   ;;  %v403_v23 = vpack.c.bf16 %v390_v18, %v390_v18 }
 0x326   :  { %1039 = vperm.xlu0 %2923, %v237_v26  }
 0x32a   :  { %1024 = vperm.xlu1 %2924, %v234_v27   ;;  %1019 = vperm.xlu2 %2925, %v233_v28  }
 0x32e   :  { %1034 = vperm.xlu0 %2923, %v236_v16  }
 0x332   :  { %1206 = vperm.xlu1 %2924, %v247_v31   ;;  %1201 = vperm.xlu2 %2925, %v246_v32  }
 0x336   :  { %1196 = vperm.xlu0 %2923, %v245_v33  }
 0x33a   :  { %1324 = vperm.xlu1 %2924, %v2658_v34   ;;  %1319 = vperm.xlu2 %2925, %v2657_v35   ;;  %v2758_v34 = vld [vmem:[%s4012_s6 + $0x88] sm:$0xff] }
 0x33c   :  { %v711_v40 = vpop.xlane.xlu0 %710 }
 0x33d   :  { %2970 = vrcp.f32 %v711_v40 }
 0x33e   :  { %1211 = vperm.xlu0 %2923, %v248_v36  }
 0x342   :  { %1309 = vperm.xlu1 %2924, %v2655_v41   ;;  %1348 = vperm.xlu2 %2925, %v2662_v45  }
 0x343   :  { %v2971_v48 = vpop.eup %2970 }
 0x344   :  { %v714_v47 = vpop.xlane.xlu1 %713  ;;  %v741_v55 = vmul.f32 %v2971_v48, %v3326_v17  ;;  %v2756_v17 = vld [vmem:[%s4012_s6 + $0x78] sm:$0xff] }
 0x345   :  { %2972 = vrcp.f32 %v714_v47  ;;  %v717_v49 = vpop.xlane.xlu2 %716 }
 0x346   :  { %1343 = vperm.xlu0 %2923, %v2661_v46   ;;  %2974 = vrcp.f32 %v717_v49  ;;  %v749_v61 = vpack.c.bf16 %v741_v55, %v741_v55 }
 0x348   :  { %v759_v5 = vunpack.c.l.b16 %v749_v61 }
 0x34a   :  { %1338 = vperm.xlu1 %2924, %v2660_v52   ;;  %1333 = vperm.xlu2 %2925, %v2659_v53  }
 0x34b   :  { %v2973_v57 = vpop.eup %2972 }
 0x34c   :  { %v742_v59 = vmul.f32 %v2973_v57, %v3330_v37  ;;  %v2975_v2 = vpop.eup %2974 }
 0x34d   :  { %v720_v63 = vpop.xlane.xlu0 %719  ;;  %v723_v0 = vpop.xlane.xlu2 %722  ;;  %v743_v37 = vmul.f32 %v2975_v2, %v3332_v39  ;;  %v2760_v39 = vld [vmem:[%s4012_s6 + $0x98] sm:$0xff] }
 0x34e   :  { %2976 = vrcp.f32 %v720_v63  ;;  %1314 = vperm.xlu0 %2923, %v2656_v58   ;;  %v750_v3 = vpack.c.bf16 %v742_v59, %v742_v59 }
 0x34f   :  { %2978 = vrcp.f32 %v723_v0  ;;  %v751_v14 = vpack.c.bf16 %v743_v37, %v743_v37 }
 0x350   :  { %v760_v6 = vunpack.c.l.b16 %v750_v3 }
 0x352   :  { %1458 = vperm.xlu1 %2924, %v2756_v17   ;;  %1463 = vperm.xlu2 %2925, %v2757_v4   ;;  %v761_v7 = vpack.c.b16 %v760_v6, %v759_v5 }
 0x354   :  { %v2977_v9 = vpop.eup %2976  ;;  %v766_v10 = vsel %vm66_vm0, %v761_v7, 0 }
 0x355   :  { %v744_v11 = vmul.f32 %v2977_v9, %v3340_v54  ;;  %775 = vmatpush.bf16.xpose.msrb.mxu2 %v766_v10  ;;  %v726_v12 = vpop.xlane.xlu0 %725  ;;  %v729_v13 = vpop.xlane.xlu2 %728  ;;  %v783_v54 = vunpack.c.l.b16 %v751_v14  ;;  %v2898_v9 = vld [vmem:[%s4013_s7 + $0x8] sm:$0xff] }
 0x356   :  { %v2979_v15 = vpop.eup %2978  ;;  %2980 = vrcp.f32 %v726_v12  ;;  %1443 = vperm.xlu0 %2923, %v2753_v8  }
 0x357   :  { %v752_v20 = vpack.c.bf16 %v744_v11, %v744_v11  ;;  %2982 = vrcp.f32 %v729_v13  ;;  %v745_v22 = vmul.f32 %v2979_v15, %v3338_v50  ;;  %v2759_v50 = vld [vmem:[%s4012_s6 + $0x90] sm:$0xff] }
 0x359   :  { %v784_v21 = vunpack.c.l.b16 %v752_v20  ;;  %v753_v32 = vpack.c.bf16 %v745_v22, %v745_v22 }
 0x35a   :  { %1478 = vperm.xlu1 %2924, %v2760_v39   ;;  %1453 = vperm.xlu2 %2925, %v2755_v19  }
 0x35b   :  { %v785_v26 = vpack.c.b16 %v784_v21, %v783_v54  ;;  %v807_v38 = vunpack.c.l.b16 %v753_v32 }
 0x35c   :  { %v2981_v27 = vpop.eup %2980  ;;  %2697 = vmatmul.msk.bf16.vlgmr.msrb.gmra.mxu2 %vm66_vm0, %v403_v23  ;;  %v304_v45 = vpop.permute.xlu1 %303 }
 0x35d   :  { %v732_v28 = vpop.xlane.xlu0 %731  ;;  %v790_v16 = vsel %vm66_vm0, %v785_v26, 0  ;;  %v746_v31 = vmul.f32 %v2981_v27, %v3348_v62  ;;  %v2983_v33 = vpop.eup %2982  ;;  %v395_v49 = vadd.f32 %v3305_v44, %v304_v45 }
 0x35e   :  { %2984 = vrcp.f32 %v732_v28  ;;  %1448 = vperm.xlu0 %2923, %v2754_v42   ;;  %799 = vmatpush.bf16.xpose.msra.mxu3 %v790_v16  ;;  %v747_v36 = vmul.f32 %v2983_v33, %v3346_v60  ;;  %v309_v58 = vpop.permute.xlu2 %308 }
 0x35f   :  { %v754_v35 = vpack.c.bf16 %v746_v31, %v746_v31  ;;  %v405_v57 = vpack.c.bf16 %v395_v49, %v395_v49  ;;  %v397_v61 = vadd.f32 %v3311_v51, %v309_v58  ;;  %v2897_v51 = vld [vmem:[%s4013_s7] sm:$0xff] }
 0x360   :  { %v755_v48 = vpack.c.bf16 %v747_v36, %v747_v36 }
 0x361   :  { %v808_v40 = vunpack.c.l.b16 %v754_v35  ;;  %v406_v0 = vpack.c.bf16 %v397_v61, %v397_v61 }
 0x362   :  { %1473 = vperm.xlu1 %2924, %v2759_v50   ;;  %1468 = vperm.xlu2 %2925, %v2758_v34   ;;  %v831_v53 = vunpack.c.l.b16 %v755_v48 }
 0x363   :  { %v809_v62 = vpack.c.b16 %v808_v40, %v807_v38 }
 0x364   :  { %v2985_v41 = vpop.eup %2984  ;;  %v858_v11 = vpop.permute.xlu1 %857 }
 0x365   :  { %v748_v46 = vmul.f32 %v2985_v41, %v3354_v1  ;;  %v814_v47 = vsel %vm66_vm0, %v809_v62, 0 }
 0x366   :  { %823 = vmatpush.bf16.xpose.msra.mxu1 %v814_v47  ;;  %v873_v27 = vpop.permute.xlu2 %872 }
 0x367   :  { %v756_v52 = vpack.c.bf16 %v748_v46, %v748_v46 }
 0x369   :  { %v832_v55 = vunpack.c.l.b16 %v756_v52 }
 0x36b   :  { %v833_v60 = vpack.c.b16 %v832_v55, %v831_v53 }
 0x36c   :  { %v863_v13 = vpop.permute.xlu1 %862 }
 0x36d   :  { %2699 = vmatmul.msk.bf16.vlgmr.msra.gmra.mxu1 %vm66_vm0, %v405_v57  ;;  %v838_v59 = vsel %vm66_vm0, %v833_v60, 0 }
 0x36e   :  { %847 = vmatpush.bf16.xpose.msra.mxu2 %v838_v59 }
 0x370   :  { %v299_v1 = vpop.permute.xlu0 %298 }
 0x371   :  { %v392_v63 = vadd.f32 %v3303_v43, %v299_v1 }
 0x373   :  { %v404_v2 = vpack.c.bf16 %v392_v63, %v392_v63 }
 0x375   :  { %2698 = vmatmul.msk.bf16.vlgmr.msra.gmra.mxu3 %vm66_vm0, %v404_v2  ;;  %2700 = vmatmul.msk.bf16.vlgmr.msra.gmra.mxu2 %vm66_vm0, %v406_v0 }
 0x378   :  { %v868_v18 = vpop.permute.xlu0 %867 }
 0x3df   :  { %v777_v44 = vpop.f32.mrf.mxu2 }
 0x3e7   :  { %v779_v3 = vpop.f32.mrf.mxu2 }
 0x3e8   :  { %v985_v3 = vpop.permute.xlu0 %984 }
 0x3ea   :  { %v825_v17 = vpop.f32.mrf.mxu1 }
 0x3f2   :  { %v827_v4 = vpop.f32.mrf.mxu1 }
 0x3f8   :  { %v801_v5 = vpop.f32.mrf.mxu3  ;;  %v849_v6 = vpop.f32.mrf.mxu2 }
 0x3f9   :  { %v854_v37 = vpack.c.bf16 %v849_v6, %v825_v17  ;;  %v853_v7 = vpack.c.bf16 %v801_v5, %v777_v44  ;;  %v980_v44 = vpop.permute.xlu1 %979  ;;  %v1004_v5 = vpop.permute.xlu2 %1003 }
 0x3fb   :  { %897 = vmatpush.bf16.msrb.mxu3 %v854_v37 }
 0x3ff   :  { %898 = vmatpush.bf16.msrb.mxu3 %v853_v7 }
 0x400   :  { %v803_v43 = vpop.f32.mrf.mxu3  ;;  %v851_v8 = vpop.f32.mrf.mxu2 }
 0x401   :  { %v1009_v7 = vpop.permute.xlu1 %1008 }
 0x402   :  { %2709 = vmatmul.msk.bf16.vlgmr.msrb.gmra.mxu3 %vm341_vm5, %v2897_v51  ;;  %v970_v51 = vpop.permute.xlu0 %969 }
 0x412   :  { %2710 = vmatmul.msk.bf16.gmra.mxu3 %vm341_vm5, %v2898_v9 }
 0x485   :  { %v900_v10 = vpop.f32.mrf.mxu3 }
 0x486   :  { %v901_v15 = vadd.f32 %v900_v10, %v858_v11 }
 0x488   :  { %v3519_v54 = vadd.f32 %v901_v15, %v3265_v30 }
 0x48a   :  { %v928_v23 = vmul.f32 %v3519_v54, %v3519_v54 }
 0x48c   :  { %v932_v32 = vsel %vm66_vm0, %v928_v23, 0.0 }
 0x48d   :  { %v902_v12 = vpop.f32.mrf.mxu3 }
 0x48e   :  { %v903_v14 = vadd.f32 %v902_v12, %v863_v13 }
 0x490   :  { %v3516_v19 = vadd.f32 %v903_v14, %v3263_v29  ;;  %v914_v29 = vsel %vm66_vm0, %v3519_v54, 0.0 }
 0x492   :  { %v929_v22 = vmul.f32 %v3516_v19, %v3516_v19  ;;  %v915_v42 = vsel %vm66_vm0, %v3516_v19, 0.0 }
 0x493   :  { %v916_v31 = vadd.f32 %v915_v42, %v914_v29  ;;  %v999_v29 = vpop.permute.xlu0 %998 }
 0x494   :  { %v933_v30 = vsel %vm66_vm0, %v929_v22, 0.0 }
 0x495   :  { %v905_v39 = vpop.f32.mrf.mxu3  ;;  %v934_v34 = vadd.f32 %v933_v30, %v932_v32  ;;  %v2901_v32 = vld [vmem:[%s4017_s11 + $0x10] sm:$0xff] }
 0x496   :  { %v906_v20 = vadd.f32 %v905_v39, %v868_v18 }
 0x498   :  { %v912_v21 = vadd.f32 %v906_v20, %v3257_v24  ;;  %v975_v20 = vpop.permute.xlu2 %974 }
 0x49a   :  { %v930_v26 = vmul.f32 %v912_v21, %v912_v21  ;;  %v917_v16 = vsel %vm66_vm0, %v912_v21, 0.0 }
 0x49b   :  { %v918_v35 = vadd.f32 %v917_v16, %v916_v31  ;;  %v2900_v31 = vld [vmem:[%s4017_s11 + $0x8] sm:$0xff] }
 0x49c   :  { %v935_v33 = vsel %vm66_vm0, %v930_v26, 0.0 }
 0x49d   :  { %v907_v28 = vpop.f32.mrf.mxu3  ;;  %v936_v40 = vadd.f32 %v935_v33, %v934_v34  ;;  %v2902_v33 = vld [vmem:[%s4017_s11 + $0x18] sm:$0xff] }
 0x49e   :  { %v908_v24 = vadd.f32 %v907_v28, %v873_v27 }
 0x4a0   :  { %v913_v50 = vadd.f32 %v908_v24, %v3259_v25  ;;  %v2899_v24 = vld [vmem:[%s4017_s11] sm:$0xff] }
 0x4a2   :  { %v919_v36 = vsel %vm66_vm0, %v913_v50, 0.0  ;;  %v931_v38 = vmul.f32 %v913_v50, %v913_v50 }
 0x4a3   :  { %v920_v62 = vadd.f32 %v919_v36, %v918_v35 }
 0x4a4   :  { %v937_v41 = vsel %vm66_vm0, %v931_v38, 0.0 }
 0x4a5   :  { %v921_v45 = vrot.slane %v920_v62, 4  ;;  %v938_v46 = vadd.f32 %v937_v41, %v936_v40  ;;  %v1050_v40 = vpop.permute.xlu2 %1049  ;;  %v1040_v41 = vpop.permute.xlu0 %1039 }
 0x4a7   :  { %v922_v47 = vadd.f32 %v921_v45, %v920_v62  ;;  %v939_v48 = vrot.slane %v938_v46, 4 }
 0x4a9   :  { %v923_v49 = vrot.slane %v922_v47, 2  ;;  %v940_v52 = vadd.f32 %v939_v48, %v938_v46 }
 0x4ab   :  { %v924_v53 = vadd.f32 %v923_v49, %v922_v47  ;;  %v941_v55 = vrot.slane %v940_v52, 2 }
 0x4ad   :  { %v925_v57 = vrot.slane %v924_v53, 1  ;;  %v942_v60 = vadd.f32 %v941_v55, %v940_v52  ;;  %v1045_v47 = vpop.permute.xlu2 %1044  ;;  %v1035_v52 = vpop.permute.xlu0 %1034 }
 0x4af   :  { %v926_v25 = vadd.f32 %v925_v57, %v924_v53  ;;  %v943_v58 = vrot.slane %v942_v60, 1 }
 0x4b1   :  { %v927_v59 = vmul.f32 %v926_v25, %v3251_v56  ;;  %v944_v61 = vadd.f32 %v943_v58, %v942_v60 }
 0x4b3   :  { %v945_v1 = vmul.f32 %v944_v61, %v3251_v56  ;;  %v946_v63 = vmul.f32 %v927_v59, %v927_v59  ;;  %v951_v9 = vsub.f32 %v913_v50, %v927_v59  ;;  %v950_v10 = vsub.f32 %v912_v21, %v927_v59  ;;  %v994_v21 = vpop.permute.xlu1 %993 }
 0x4b4   :  { %v948_v11 = vsub.f32 %v3519_v54, %v927_v59  ;;  %v949_v12 = vsub.f32 %v3516_v19, %v927_v59 }
 0x4b5   :  { %v947_v0 = vsub.f32 %v945_v1, %v946_v63 }
 0x4b7   :  { %v952_v2 = vadd.f32 1e-05, %v947_v0 }
 0x4b9   :  { %2986 = vrsqrt.f32 %v952_v2  ;;  %vm959_vm9 = vweird.f32 %v952_v2 }
 0x4bb   :  { %v1055_v38 = vpop.permute.xlu1 %1054 }
 0x4bf   :  { %v2987_v17 = vpop.eup %2986 }
 0x4c0   :  { %v954_v4 = vmul.f32 %v2987_v17, %v952_v2  ;;  %vm960_vm8 = vweird.f32 %v2987_v17  ;;  %v1020_v2 = vpop.permute.xlu2 %1019 }
 0x4c1   :  { %vm961_vm10 = vmor %vm959_vm9, %vm960_vm8 }
 0x4c2   :  { %v955_v6 = vmul.f32 %v2987_v17, %v954_v4 }
 0x4c3   :  { %v1030_v45 = vpop.permute.xlu1 %1029 }
 0x4c4   :  { %v956_v37 = vmul.f32 0.5, %v955_v6 }
 0x4c6   :  { %v957_v43 = vsub.f32 1.5, %v956_v37 }
 0x4c8   :  { %v958_v8 = vmul.f32 %v2987_v17, %v957_v43 }
 0x4ca   :  { %v962_v13 = vsel %vm961_vm10, %v2987_v17, %v958_v8 }
 0x4cb   :  { %v965_v14 = vmul.f32 %v962_v13, %v950_v10  ;;  %v966_v15 = vmul.f32 %v962_v13, %v951_v9  ;;  %v963_v18 = vmul.f32 %v962_v13, %v948_v11  ;;  %v964_v39 = vmul.f32 %v962_v13, %v949_v12  ;;  %v1025_v59 = vpop.permute.xlu1 %1024 }
 0x4cd   :  { %v989_v22 = vmul.f32 %v980_v44, %v965_v14  ;;  %v990_v23 = vmul.f32 %v985_v3, %v966_v15  ;;  %v987_v42 = vmul.f32 %v970_v51, %v963_v18  ;;  %v988_v26 = vmul.f32 %v975_v20, %v964_v39 }
 0x4cf   :  { %v3541_v27 = vadd.f32 %v1004_v5, %v989_v22  ;;  %v3543_v28 = vadd.f32 %v1009_v7, %v990_v23  ;;  %v3547_v19 = vadd.f32 %v994_v21, %v987_v42  ;;  %v3549_v30 = vadd.f32 %v999_v29, %v988_v26 }
 0x4d1   :  { %v1016_v54 = vpack.c.bf16 %v3543_v28, %v3541_v27  ;;  %v1015_v16 = vpack.c.bf16 %v3549_v30, %v3547_v19 }
 0x4d3   :  { %1095 = vmatpush.bf16.msrb.mxu1 %v1016_v54 }
 0x4d7   :  { %1096 = vmatpush.bf16.msrb.mxu1 %v1015_v16 }
 0x4da   :  { %2727 = vmatmul.msk.bf16.vlgmr.msrb.gmra.mxu1 %vm341_vm5, %v2899_v24 }
 0x4ea   :  { %2728 = vmatmul.msk.bf16.gmra.mxu1 %vm341_vm5, %v2900_v31 }
 0x4fa   :  { %2729 = vmatmul.msk.bf16.gmra.mxu1 %vm341_vm5, %v2901_v32 }
 0x50a   :  { %2730 = vmatmul.msk.bf16.gmra.mxu1 %vm341_vm5, %v2902_v33 }
 0x557   :  { %v1098_v50 = vpop.f32.mrf.mxu1 }
 0x558   :  { %v3584_v3 = vadd.f32 %v1098_v50, %v1020_v2 }
 0x55a   :  { %v1126_v8 = vmul.f32 0.044715, %v3584_v3 }
 0x55c   :  { %v1134_v39 = vmul.f32 %v1126_v8, %v3584_v3 }
 0x55e   :  { %v1142_v31 = vmul.f32 %v1134_v39, %v3584_v3  ;;  %v1202_v39 = vpop.permute.xlu2 %1201 }
 0x55f   :  { %v1100_v34 = vpop.f32.mrf.mxu1 }
 0x560   :  { %v3579_v61 = vadd.f32 %v1100_v34, %v1025_v59 }
 0x562   :  { %v1127_v5 = vmul.f32 0.044715, %v3579_v61 }
 0x564   :  { %v1135_v12 = vmul.f32 %v1127_v5, %v3579_v61 }
 0x566   :  { %v1143_v29 = vmul.f32 %v1135_v12, %v3579_v61 }
 0x567   :  { %v1103_v35 = vpop.f32.mrf.mxu1 }
 0x568   :  { %v3577_v25 = vadd.f32 %v1103_v35, %v1030_v45  ;;  %v1151_v50 = vadd.f32 %v1143_v29, %v3579_v61  ;;  %v1150_v35 = vadd.f32 %v1142_v31, %v3584_v3 }
 0x56a   :  { %v1128_v17 = vmul.f32 0.044715, %v3577_v25  ;;  %v1120_v8 = vmul.f32 0.5, %v3577_v25 }
 0x56c   :  { %v1136_v9 = vmul.f32 %v1128_v17, %v3577_v25 }
 0x56e   :  { %v1144_v23 = vmul.f32 %v1136_v9, %v3577_v25 }
 0x56f   :  { %v1105_v36 = vpop.f32.mrf.mxu1 }
 0x570   :  { %v3573_v53 = vadd.f32 %v1105_v36, %v1035_v52  ;;  %v1152_v24 = vadd.f32 %v1144_v23, %v3577_v25  ;;  %v2904_v25 = vld [vmem:[%s4019_s13 + $0x8] sm:$0xff] }
 0x572   :  { %v1129_v1 = vmul.f32 0.044715, %v3573_v53  ;;  %v1160_v34 = vmul.f32 0.7978846, %v1152_v24 }
 0x574   :  { %v1137_v6 = vmul.f32 %v1129_v1, %v3573_v53 }
 0x576   :  { %v1145_v15 = vmul.f32 %v1137_v6, %v3573_v53 }
 0x577   :  { %v1108_v62 = vpop.f32.mrf.mxu1 }
 0x578   :  { %v3571_v49 = vadd.f32 %v1108_v62, %v1040_v41  ;;  %v1153_v21 = vadd.f32 %v1145_v15, %v3573_v53  ;;  %v1158_v62 = vmul.f32 0.7978846, %v1150_v35 }
 0x57a   :  { %v1130_v57 = vmul.f32 0.044715, %v3571_v49  ;;  %v1161_v33 = vmul.f32 0.7978846, %v1153_v21  ;;  %v1122_v17 = vmul.f32 0.5, %v3571_v49 }
 0x57c   :  { %v1138_v44 = vmul.f32 %v1130_v57, %v3571_v49 }
 0x57e   :  { %v1146_v43 = vmul.f32 %v1138_v44, %v3571_v49 }
 0x57f   :  { %v1110_v46 = vpop.f32.mrf.mxu1 }
 0x580   :  { %v3569_v48 = vadd.f32 %v1110_v46, %v1045_v47  ;;  %v1154_v18 = vadd.f32 %v1146_v43, %v3571_v49 }
 0x582   :  { %v1131_v55 = vmul.f32 0.044715, %v3569_v48  ;;  %v1162_v54 = vmul.f32 0.7978846, %v1154_v18 }
 0x584   :  { %v1139_v63 = vmul.f32 %v1131_v55, %v3569_v48 }
 0x586   :  { %v1147_v7 = vmul.f32 %v1139_v63, %v3569_v48  ;;  %v1123_v63 = vmul.f32 0.5, %v3569_v48 }
 0x587   :  { %v1113_v60 = vpop.f32.mrf.mxu1 }
 0x588   :  { %v1114_v58 = vadd.f32 %v1113_v60, %v1050_v40  ;;  %v1155_v14 = vadd.f32 %v1147_v7, %v3569_v48 }
 0x58a   :  { %v1132_v0 = vmul.f32 0.044715, %v1114_v58  ;;  %v1163_v26 = vmul.f32 0.7978846, %v1155_v14  ;;  %v1124_v47 = vmul.f32 0.5, %v1114_v58 }
 0x58c   :  { %v1140_v4 = vmul.f32 %v1132_v0, %v1114_v58 }
 0x58e   :  { %v1148_v37 = vmul.f32 %v1140_v4, %v1114_v58 }
 0x58f   :  { %v1115_v51 = vpop.f32.mrf.mxu1 }
 0x590   :  { %v1156_v10 = vadd.f32 %v1148_v37, %v1114_v58  ;;  %v1116_v11 = vadd.f32 %v1115_v51, %v1055_v38  ;;  %v1159_v38 = vmul.f32 0.7978846, %v1151_v50  ;;  %v1121_v58 = vmul.f32 0.5, %v3573_v53  ;;  %v2903_v53 = vld [vmem:[%s4019_s13] sm:$0xff] }
 0x592   :  { %v1133_v13 = vmul.f32 0.044715, %v1116_v11  ;;  %v1164_v20 = vmul.f32 0.7978846, %v1156_v10  ;;  %v1125_v52 = vmul.f32 0.5, %v1116_v11 }
 0x594   :  { %v1141_v22 = vmul.f32 %v1133_v13, %v1116_v11  ;;  %2988 = vtanh.f32 %v1164_v20  ;;  %v1118_v13 = vmul.f32 0.5, %v3584_v3 }
 0x595   :  { %2990 = vtanh.f32 %v1163_v26 }
 0x596   :  { %v1149_v42 = vmul.f32 %v1141_v22, %v1116_v11  ;;  %2992 = vtanh.f32 %v1162_v54  ;;  %v1197_v22 = vpop.permute.xlu0 %1196 }
 0x598   :  { %v1157_v16 = vadd.f32 %v1149_v42, %v1116_v11  ;;  %v1119_v11 = vmul.f32 0.5, %v3579_v61  ;;  %v1207_v42 = vpop.permute.xlu1 %1206 }
 0x59a   :  { %v1165_v32 = vmul.f32 0.7978846, %v1157_v16  ;;  %v2989_v36 = vpop.eup %2988 }
 0x59b   :  { %v2991_v40 = vpop.eup %2990  ;;  %v1180_v45 = vadd.f32 1.0, %v2989_v36 }
 0x59c   :  { %2994 = vtanh.f32 %v1165_v32  ;;  %v2993_v41 = vpop.eup %2992  ;;  %v1179_v57 = vadd.f32 1.0, %v2991_v40 }
 0x59d   :  { %2996 = vtanh.f32 %v1161_v33  ;;  %v1188_v59 = vmul.f32 %v1180_v45, %v1124_v47  ;;  %v1178_v0 = vadd.f32 1.0, %v2993_v41 }
 0x59e   :  { %2998 = vtanh.f32 %v1160_v34  ;;  %v1187_v4 = vmul.f32 %v1179_v57, %v1123_v63  ;;  %v1212_v50 = vpop.permute.xlu0 %1211 }
 0x59f   :  { %3000 = vtanh.f32 %v1159_v38  ;;  %v1186_v37 = vmul.f32 %v1178_v0, %v1122_v17 }
 0x5a0   :  { %3002 = vtanh.f32 %v1158_v62 }
 0x5a1   :  { %v1192_v43 = vpack.c.bf16 %v1187_v4, %v1186_v37 }
 0x5a2   :  { %v2995_v46 = vpop.eup %2994 }
 0x5a3   :  { %v1181_v55 = vadd.f32 1.0, %v2995_v46  ;;  %v2997_v60 = vpop.eup %2996 }
 0x5a4   :  { %v2999_v2 = vpop.eup %2998  ;;  %v1177_v5 = vadd.f32 1.0, %v2997_v60 }
 0x5a5   :  { %v1189_v1 = vmul.f32 %v1181_v55, %v1125_v52  ;;  %v3001_v6 = vpop.eup %3000  ;;  %v1176_v7 = vadd.f32 1.0, %v2999_v2 }
 0x5a6   :  { %v3003_v51 = vpop.eup %3002  ;;  %v1185_v9 = vmul.f32 %v1177_v5, %v1121_v58  ;;  %v1175_v10 = vadd.f32 1.0, %v3001_v6 }
 0x5a7   :  { %v1193_v44 = vpack.c.bf16 %v1189_v1, %v1188_v59  ;;  %v1184_v48 = vmul.f32 %v1176_v7, %v1120_v8  ;;  %v1174_v12 = vadd.f32 1.0, %v3003_v51 }
 0x5a8   :  { %v1183_v14 = vmul.f32 %v1175_v10, %v1119_v11  ;;  %v1325_v10 = vpop.permute.xlu1 %1324 }
 0x5a9   :  { %1235 = vmatpush.bf16.msrb.mxu2 %v1193_v44  ;;  %v1191_v49 = vpack.c.bf16 %v1185_v9, %v1184_v48  ;;  %v1182_v15 = vmul.f32 %v1174_v12, %v1118_v13  ;;  %v1320_v9 = vpop.permute.xlu2 %1319  ;;  %v1344_v12 = vpop.permute.xlu0 %1343 }
 0x5ab   :  { %v1190_v18 = vpack.c.bf16 %v1183_v14, %v1182_v15 }
 0x5ad   :  { %1236 = vmatpush.bf16.msrb.mxu2 %v1192_v43 }
 0x5b0   :  { %v1310_v15 = vpop.permute.xlu1 %1309 }
 0x5b1   :  { %1237 = vmatpush.bf16.msrb.mxu2 %v1191_v49  ;;  %v1349_v14 = vpop.permute.xlu2 %1348 }
 0x5b5   :  { %1238 = vmatpush.bf16.msrb.mxu2 %v1190_v18 }
 0x5b8   :  { %2739 = vmatmul.msk.bf16.vlgmr.msrb.gmra.mxu2 %vm1224_vm11, %v2903_v53 }
 0x5c8   :  { %2740 = vmatmul.msk.bf16.gmra.mxu2 %vm1224_vm11, %v2904_v25 }
 0x63b   :  { %v1240_v61 = vpop.f32.mrf.mxu2 }
 0x63c   :  { %v1241_v23 = vadd.f32 %v1240_v61, %v1197_v22 }
 0x63e   :  { %v3623_v54 = vadd.f32 %v1241_v23, %v3547_v19 }
 0x640   :  { %v1268_v31 = vmul.f32 %v3623_v54, %v3623_v54 }
 0x642   :  { %v1272_v38 = vsel %vm66_vm0, %v1268_v31, 0.0 }
 0x643   :  { %v1242_v3 = vpop.f32.mrf.mxu2 }
 0x644   :  { %v1243_v20 = vadd.f32 %v1242_v3, %v1202_v39 }
 0x646   :  { %v3620_v21 = vadd.f32 %v1243_v20, %v3549_v30  ;;  %v1254_v30 = vsel %vm66_vm0, %v3623_v54, 0.0 }
 0x648   :  { %v1269_v24 = vmul.f32 %v3620_v21, %v3620_v21  ;;  %v1255_v32 = vsel %vm66_vm0, %v3620_v21, 0.0 }
 0x649   :  { %v1256_v36 = vadd.f32 %v1255_v32, %v1254_v30  ;;  %v1334_v30 = vpop.permute.xlu2 %1333 }
 0x64a   :  { %v1273_v19 = vsel %vm66_vm0, %v1269_v24, 0.0 }
 0x64b   :  { %v1245_v26 = vpop.f32.mrf.mxu2  ;;  %v1274_v41 = vadd.f32 %v1273_v19, %v1272_v38  ;;  %v2907_v38 = vld [vmem:[%s4011_s5 + $0x40] sm:$0xff] }
 0x64c   :  { %v1246_v29 = vadd.f32 %v1245_v26, %v1207_v42 }
 0x64e   :  { %v1252_v16 = vadd.f32 %v1246_v29, %v3541_v27  ;;  %v1315_v29 = vpop.permute.xlu0 %1314 }
 0x650   :  { %v1270_v33 = vmul.f32 %v1252_v16, %v1252_v16  ;;  %v1257_v35 = vsel %vm66_vm0, %v1252_v16, 0.0 }
 0x651   :  { %v1258_v45 = vadd.f32 %v1257_v35, %v1256_v36  ;;  %v2906_v36 = vld [vmem:[%s4011_s5 + $0x38] sm:$0xff] }
 0x652   :  { %v1275_v40 = vsel %vm66_vm0, %v1270_v33, 0.0 }
 0x653   :  { %v1247_v34 = vpop.f32.mrf.mxu2  ;;  %v1276_v52 = vadd.f32 %v1275_v40, %v1274_v41  ;;  %v2908_v40 = vld [vmem:[%s4011_s5 + $0x48] sm:$0xff] }
 0x654   :  { %v1248_v27 = vadd.f32 %v1247_v34, %v1212_v50 }
 0x656   :  { %v1253_v62 = vadd.f32 %v1248_v27, %v3543_v28  ;;  %v2905_v27 = vld [vmem:[%s4011_s5 + $0x30] sm:$0xff] }
 0x658   :  { %v1259_v46 = vsel %vm66_vm0, %v1253_v62, 0.0  ;;  %v1271_v47 = vmul.f32 %v1253_v62, %v1253_v62 }
 0x659   :  { %v1260_v55 = vadd.f32 %v1259_v46, %v1258_v45  ;;  %v1464_v46 = vpop.permute.xlu2 %1463 }
 0x65a   :  { %v1277_v57 = vsel %vm66_vm0, %v1271_v47, 0.0 }
 0x65b   :  { %v1261_v60 = vrot.slane %v1260_v55, 4  ;;  %v1278_v59 = vadd.f32 %v1277_v57, %v1276_v52 }
 0x65d   :  { %v1262_v1 = vadd.f32 %v1261_v60, %v1260_v55  ;;  %v1279_v63 = vrot.slane %v1278_v59, 4 }
 0x65f   :  { %v1263_v0 = vrot.slane %v1262_v1, 2  ;;  %v1280_v2 = vadd.f32 %v1279_v63, %v1278_v59 }
 0x661   :  { %v1264_v44 = vadd.f32 %v1263_v0, %v1262_v1  ;;  %v1281_v17 = vrot.slane %v1280_v2, 2  ;;  %v1454_v52 = vpop.permute.xlu2 %1453 }
 0x663   :  { %v1265_v4 = vrot.slane %v1264_v44, 1  ;;  %v1282_v5 = vadd.f32 %v1281_v17, %v1280_v2 }
 0x665   :  { %v1266_v28 = vadd.f32 %v1265_v4, %v1264_v44  ;;  %v1283_v6 = vrot.slane %v1282_v5, 1 }
 0x667   :  { %v1267_v37 = vmul.f32 %v1266_v28, %v3251_v56  ;;  %v1284_v58 = vadd.f32 %v1283_v6, %v1282_v5 }
 0x669   :  { %v1285_v7 = vmul.f32 %v1284_v58, %v3251_v56  ;;  %v1286_v51 = vmul.f32 %v1267_v37, %v1267_v37  ;;  %v1291_v25 = vsub.f32 %v1253_v62, %v1267_v37  ;;  %v1290_v61 = vsub.f32 %v1252_v16, %v1267_v37  ;;  %v1339_v16 = vpop.permute.xlu1 %1338  ;;  %v1444_v62 = vpop.permute.xlu0 %1443 }
 0x66a   :  { %v1288_v3 = vsub.f32 %v3623_v54, %v1267_v37  ;;  %v1289_v39 = vsub.f32 %v3620_v21, %v1267_v37  ;;  %v1469_v6 = vpop.permute.xlu2 %1468 }
 0x66b   :  { %v1287_v43 = vsub.f32 %v1285_v7, %v1286_v51 }
 0x66d   :  { %v1292_v8 = vadd.f32 1e-05, %v1287_v43 }
 0x66f   :  { %3004 = vrsqrt.f32 %v1292_v8  ;;  %vm1299_vm13 = vweird.f32 %v1292_v8 }
 0x671   :  { %v1459_v60 = vpop.permute.xlu1 %1458  ;;  %v1449_v59 = vpop.permute.xlu0 %1448 }
 0x675   :  { %v3005_v48 = vpop.eup %3004 }
 0x676   :  { %v1294_v11 = vmul.f32 %v3005_v48, %v1292_v8  ;;  %vm1300_vm12 = vweird.f32 %v3005_v48 }
 0x677   :  { %vm1301_vm14 = vmor %vm1299_vm13, %vm1300_vm12 }
 0x678   :  { %v1295_v49 = vmul.f32 %v3005_v48, %v1294_v11 }
 0x679   :  { %v1479_v28 = vpop.permute.xlu1 %1478 }
 0x67a   :  { %v1296_v13 = vmul.f32 0.5, %v1295_v49 }
 0x67c   :  { %v1297_v18 = vsub.f32 1.5, %v1296_v13 }
 0x67e   :  { %v1298_v53 = vmul.f32 %v3005_v48, %v1297_v18 }
 0x680   :  { %v1302_v20 = vsel %vm1301_vm14, %v3005_v48, %v1298_v53 }
 0x681   :  { %v1306_v22 = vmul.f32 %v1302_v20, %v1291_v25  ;;  %v1305_v23 = vmul.f32 %v1302_v20, %v1290_v61  ;;  %v1303_v42 = vmul.f32 %v1302_v20, %v1288_v3  ;;  %v1304_v26 = vmul.f32 %v1302_v20, %v1289_v39  ;;  %v1474_v43 = vpop.permute.xlu1 %1473 }
 0x683   :  { %v1330_v24 = vmul.f32 %v1325_v10, %v1306_v22  ;;  %v1329_v31 = vmul.f32 %v1320_v9, %v1305_v23  ;;  %v1327_v32 = vmul.f32 %v1310_v15, %v1303_v42  ;;  %v1328_v33 = vmul.f32 %v1315_v29, %v1304_v26 }
 0x685   :  { %v3645_v50 = vadd.f32 %v1344_v12, %v1329_v31  ;;  %v3647_v34 = vadd.f32 %v1349_v14, %v1330_v24  ;;  %v3651_v21 = vadd.f32 %v1334_v30, %v1327_v32  ;;  %v3653_v19 = vadd.f32 %v1339_v16, %v1328_v33 }
 0x687   :  { %v1440_v54 = vpack.c.bf16 %v3647_v34, %v3645_v50  ;;  %v1439_v35 = vpack.c.bf16 %v3653_v19, %v3651_v21 }
 0x689   :  { %1555 = vmatpush.bf16.msra.mxu3 %v1440_v54 }
 0x68d   :  { %1556 = vmatpush.bf16.msra.mxu3 %v1439_v35 }
 0x690   :  { %2837 = vmatmul.msk.bf16.vlgmr.msra.gmra.mxu3 %vm341_vm5, %v2905_v27 }
 0x6a0   :  { %2838 = vmatmul.msk.bf16.gmra.mxu3 %vm341_vm5, %v2906_v36 }
 0x6b0   :  { %2839 = vmatmul.msk.bf16.gmra.mxu3 %vm341_vm5, %v2907_v38 }
 0x6c0   :  { %2840 = vmatmul.msk.bf16.gmra.mxu3 %vm341_vm5, %v2908_v40 }
 0x713   :  { %v1558_v41 = vpop.f32.mrf.mxu3 }
 0x714   :  { %v1559_v45 = vadd.f32 %v1558_v41, %v1444_v62 }
 0x716   :  { %1596 = vxpose.xlu0.b32.start.end [1/1] (short) (narrow) %v1559_v45, 16 }
 0x71b   :  { %v1560_v47 = vpop.f32.mrf.mxu3 }
 0x71c   :  { %v1561_v63 = vadd.f32 %v1560_v47, %v1449_v59 }
 0x723   :  { %v1563_v55 = vpop.f32.mrf.mxu3 }
 0x724   :  { %v1564_v57 = vadd.f32 %v1563_v55, %v1454_v52  ;;  %v2909_v52 = vld [vmem:[%s4011_s5 + $0x50] sm:$0xff] }
 0x725   :  { %2841 = vmatmul.msk.bf16.gmra.mxu3 %vm341_vm5, %v2909_v52 }
 0x726   :  { %1660 = vxpose.xlu1.b32.start.end [1/1] (short) (narrow) %v1564_v57, 16  ;;  %v3062_v57 = vld [vmem:[%s4007_s1] sm:$0xff] }
 0x72b   :  { %v1565_v1 = vpop.f32.mrf.mxu3 }
 0x72c   :  { %v1566_v0 = vadd.f32 %v1565_v1, %v1459_v60 }
 0x72e   :  { %v2938_v2 = vpack.i.bf16 %v1561_v63, %v1566_v0 }
 0x730   :  { %2939 = vxpose.xlu2.b32.start.end [1/1] (short) (narrow) %v2938_v2, 16 }
 0x733   :  { %v1568_v44 = vpop.f32.mrf.mxu3 }
 0x734   :  { %v1569_v17 = vadd.f32 %v1568_v44, %v1464_v46 }
 0x736   :  { %v1588_v4 = vpack.c.bf16 %v1569_v17, %v1569_v17  ;;  %v3063_v17 = vld [vmem:[%s4007_s1 + $0x8] sm:$0xff] }
 0x738   :  { %v1741_v5 = vsel %vm552_vm6, %v1588_v4, 0 }
 0x739   :  { %1750 = vmatpush.bf16.msra.mxu2 %v1741_v5 }
 0x73b   :  { %v1570_v37 = vpop.f32.mrf.mxu3 }
 0x73c   :  { %v1571_v58 = vadd.f32 %v1570_v37, %v1469_v6 }
 0x73e   :  { %v1589_v7 = vpack.c.bf16 %v1571_v58, %v1571_v58 }
 0x740   :  { %v1766_v51 = vsel %vm552_vm6, %v1589_v7, 0 }
 0x741   :  { %1775 = vmatpush.bf16.msrb.mxu2 %v1766_v51 }
 0x743   :  { %v1573_v8 = vpop.f32.mrf.mxu3 }
 0x744   :  { %v1574_v9 = vadd.f32 %v1573_v8, %v1474_v43 }
 0x746   :  { %v1590_v10 = vpack.c.bf16 %v1574_v9, %v1574_v9 }
 0x748   :  { %v1791_v48 = vsel %vm552_vm6, %v1590_v10, 0 }
 0x749   :  { %1800 = vmatpush.bf16.msra.mxu0 %v1791_v48 }
 0x74b   :  { %v1575_v11 = vpop.f32.mrf.mxu3 }
 0x74c   :  { %v1576_v12 = vadd.f32 %v1575_v11, %v1479_v28 }
 0x74e   :  { %v1591_v49 = vpack.c.bf16 %v1576_v12, %v1576_v12 }
 0x750   :  { %v1816_v13 = vsel %vm552_vm6, %v1591_v49, 0 }
 0x751   :  { %1825 = vmatpush.bf16.msra.mxu1 %v1816_v13 }
 0x7ba   :  { %v1612_v14 = vpop.trf.xlu0 }
 0x7bb   :  { %v1724_v15 = vpack.c.bf16 %v1612_v14, %v1612_v14 }
 0x7bd   :  { %v1734_v25 = vunpack.c.l.b16 %v1724_v15 }
 0x7c2   :  { %v1613_v18 = vpop.trf.xlu0 }
 0x7c3   :  { %v1725_v53 = vpack.c.bf16 %v1613_v18, %v1613_v18 }
 0x7c5   :  { %v1735_v61 = vunpack.c.l.b16 %v1725_v53 }
 0x7c7   :  { %v1736_v3 = vpack.c.b16 %v1735_v61, %v1734_v25 }
 0x7c9   :  { %2843 = vmatmul.msk.bf16.vlgmr.msra.gmra.mxu2 %vm548_vm7, %v1736_v3  ;;  %v2940_v39 = vpop.trf.xlu2  ;;  %v2761_v3 = vld [vmem:[%s4012_s6 + $0xa0] sm:$0xff] }
 0x7ca   :  { %v1676_v20 = vpop.trf.xlu1  ;;  %v2944_v22 = vunpack.i.h.bf16 %v2940_v39  ;;  %v2941_v23 = vunpack.i.l.bf16 %v2940_v39  ;;  %v2910_v39 = vld [vmem:[%s4011_s5 + $0x58] sm:$0xff] }
 0x7cb   :  { %v1728_v29 = vpack.c.bf16 %v1676_v20, %v1676_v20  ;;  %2842 = vmatmul.msk.bf16.gmra.mxu3 %vm341_vm5, %v2910_v39  ;;  %v2801_v39 = vld [vmem:[%s4018_s12 + $0x60] sm:$0xff] }
 0x7cc   :  { %v1726_v42 = vpack.c.bf16 %v2944_v22, %v2944_v22  ;;  %v1730_v26 = vpack.c.bf16 %v2941_v23, %v2941_v23 }
 0x7cd   :  { %v1784_v35 = vunpack.c.l.b16 %v1728_v29 }
 0x7ce   :  { %v1759_v36 = vunpack.c.l.b16 %v1726_v42  ;;  %v1809_v38 = vunpack.c.l.b16 %v1730_v26 }
 0x7d1   :  { %v2945_v24 = vpop.trf.xlu2 }
 0x7d2   :  { %v2949_v31 = vunpack.i.h.bf16 %v2945_v24  ;;  %v2946_v32 = vunpack.i.l.bf16 %v2945_v24  ;;  %v1677_v33 = vpop.trf.xlu1 }
 0x7d3   :  { %v1729_v30 = vpack.c.bf16 %v1677_v33, %v1677_v33 }
 0x7d4   :  { %v1727_v16 = vpack.c.bf16 %v2949_v31, %v2949_v31  ;;  %v1731_v54 = vpack.c.bf16 %v2946_v32, %v2946_v32 }
 0x7d5   :  { %v1785_v27 = vunpack.c.l.b16 %v1729_v30 }
 0x7d6   :  { %v1760_v40 = vunpack.c.l.b16 %v1727_v16  ;;  %v1810_v62 = vunpack.c.l.b16 %v1731_v54 }
 0x7d7   :  { %v1786_v41 = vpack.c.b16 %v1785_v27, %v1784_v35 }
 0x7d8   :  { %v1761_v45 = vpack.c.b16 %v1760_v40, %v1759_v36  ;;  %v1811_v46 = vpack.c.b16 %v1810_v62, %v1809_v38 }
 0x7d9   :  { %2845 = vmatmul.msk.bf16.vlgmr.msra.gmra.mxu0 %vm548_vm7, %v1786_v41 }
 0x7da   :  { %2844 = vmatmul.msk.bf16.vlgmr.msrb.gmra.mxu2 %vm548_vm7, %v1761_v45  ;;  %2846 = vmatmul.msk.bf16.vlgmr.msra.gmra.mxu1 %vm548_vm7, %v1811_v46  ;;  %vm2634_vm7 = vcmask 1041409  }
 0x84c   :  { %v1752_v47 = vpop.f32.mrf.mxu2 }
 0x84d   :  { %v1832_v55 = vmul.f32 0.35355338, %v1752_v47 }
 0x84f   :  { %v1840_v60 = vadd.f32 %v3062_v57, %v1832_v55 }
 0x851   :  { %v1848_v59 = vsel %vm66_vm0, %v1840_v60, -inf }
 0x852   :  { %1849 = vmax.xlane.f32.xlu0 %v1848_v59 }
 0x854   :  { %v1754_v1 = vpop.f32.mrf.mxu2 }
 0x855   :  { %v1833_v63 = vmul.f32 0.35355338, %v1754_v1 }
 0x856   :  { %v1802_v0 = vpop.f32.mrf.mxu0 }
 0x857   :  { %v1836_v2 = vmul.f32 0.35355338, %v1802_v0  ;;  %v1827_v44 = vpop.f32.mrf.mxu1  ;;  %v1841_v4 = vadd.f32 %v3063_v17, %v1833_v63 }
 0x858   :  { %v1838_v5 = vmul.f32 0.35355338, %v1827_v44 }
 0x859   :  { %v1851_v28 = vsel %vm66_vm0, %v1841_v4, -inf  ;;  %v1844_v6 = vadd.f32 %v3062_v57, %v1836_v2 }
 0x85a   :  { %1852 = vmax.xlane.f32.xlu2 %v1851_v28  ;;  %v1846_v37 = vadd.f32 %v3062_v57, %v1838_v5 }
 0x85b   :  { %v1860_v58 = vsel %vm66_vm0, %v1844_v6, -inf }
 0x85c   :  { %1861 = vmax.xlane.f32.xlu0 %v1860_v58  ;;  %v1866_v7 = vsel %vm66_vm0, %v1846_v37, -inf }
 0x85d   :  { %v1777_v51 = vpop.f32.mrf.mxu2  ;;  %1867 = vmax.xlane.f32.xlu1 %v1866_v7 }
 0x85e   :  { %v1834_v43 = vmul.f32 0.35355338, %v1777_v51  ;;  %v1804_v8 = vpop.f32.mrf.mxu0  ;;  %v2769_v51 = vld [vmem:[%s4014_s8 + $0x20] sm:$0xff] }
 0x85f   :  { %v1837_v9 = vmul.f32 0.35355338, %v1804_v8  ;;  %v1829_v10 = vpop.f32.mrf.mxu1  ;;  %v2764_v8 = vld [vmem:[%s4012_s6 + $0xb8] sm:$0xff] }
 0x860   :  { %v1842_v48 = vadd.f32 %v3062_v57, %v1834_v43  ;;  %v1839_v49 = vmul.f32 0.35355338, %v1829_v10  ;;  %v2770_v43 = vld [vmem:[%s4014_s8 + $0x28] sm:$0xff] }
 0x861   :  { %v1845_v11 = vadd.f32 %v3063_v17, %v1837_v9  ;;  %v2772_v9 = vld [vmem:[%s4014_s8 + $0x38] sm:$0xff]  ;;  %v2762_v10 = vld [vmem:[%s4012_s6 + $0xa8] sm:$0xff] }
 0x862   :  { %v1854_v12 = vsel %vm66_vm0, %v1842_v48, -inf  ;;  %v1847_v18 = vadd.f32 %v3063_v17, %v1839_v49  ;;  %v2776_v49 = vld [vmem:[%s4015_s9 + $0x58] sm:$0xff] }
 0x863   :  { %v1863_v13 = vsel %vm66_vm0, %v1845_v11, -inf }
 0x864   :  { %1864 = vmax.xlane.f32.xlu2 %v1863_v13  ;;  %1855 = vmax.xlane.f32.xlu0 %v1854_v12  ;;  %v1869_v61 = vsel %vm66_vm0, %v1847_v18, -inf  ;;  %v2775_v12 = vld [vmem:[%s4015_s9 + $0x50] sm:$0xff]  ;;  %v2774_v13 = vld [vmem:[%s4015_s9 + $0x48] sm:$0xff] }
 0x865   :  { %v1779_v14 = vpop.f32.mrf.mxu2 }
 0x866   :  { %v1835_v15 = vmul.f32 0.35355338, %v1779_v14  ;;  %v2780_v14 = vld [vmem:[%s4016_s10 + $0x58] sm:$0xff] }
 0x868   :  { %v1843_v53 = vadd.f32 %v3063_v17, %v1835_v15  ;;  %v2773_v15 = vld [vmem:[%s4015_s9 + $0x40] sm:$0xff] }
 0x86a   :  { %v1857_v25 = vsel %vm66_vm0, %v1843_v53, -inf }
 0x86b   :  { %1858 = vmax.xlane.f32.xlu1 %v1857_v25  ;;  %v2778_v25 = vld [vmem:[%s4016_s10 + $0x48] sm:$0xff] }
 0x86c   :  { %1870 = vmax.xlane.f32.xlu0 %v1869_v61  ;;  %v2802_v61 = vld [vmem:[%s4018_s12 + $0x68] sm:$0xff] }
 0x880   :  { %1483 = vperm.xlu0 %2923, %v2761_v3   ;;  %v2804_v3 = vld [vmem:[%s4018_s12 + $0x78] sm:$0xff] }
 0x8c5   :  { %v1850_v20 = vpop.xlane.xlu0 %1849 }
 0x8c6   :  { %v1872_v22 = vsub.f32 %v1840_v60, %v1850_v20  ;;  %v2797_v20 = vld [vmem:[%s4018_s12 + $0x40] sm:$0xff] }
 0x8c8   :  { %v1880_v23 = vmul.f32 1.442695, %v1872_v22  ;;  %v2799_v22 = vld [vmem:[%s4018_s12 + $0x50] sm:$0xff] }
 0x8ca   :  { %3006 = vpow2.f32 %v1880_v23  ;;  %v2800_v23 = vld [vmem:[%s4018_s12 + $0x58] sm:$0xff] }
 0x8cd   :  { %v1853_v42 = vpop.xlane.xlu2 %1852 }
 0x8ce   :  { %v1873_v26 = vsub.f32 %v1841_v4, %v1853_v42  ;;  %v2810_v42 = vld [vmem:[%s4020_s14 + $0x28] sm:$0xff] }
 0x8cf   :  { %v1862_v29 = vpop.xlane.xlu0 %1861 }
 0x8d0   :  { %v3706_v24 = vpop.eup %3006  ;;  %v1882_v31 = vmul.f32 1.442695, %v1873_v26  ;;  %v1876_v32 = vsub.f32 %v1844_v6, %v1862_v29  ;;  %v1868_v16 = vpop.xlane.xlu1 %1867  ;;  %v2763_v6 = vld [vmem:[%s4012_s6 + $0xb0] sm:$0xff]  ;;  %v2798_v26 = vld [vmem:[%s4018_s12 + $0x48] sm:$0xff]  ;;  %v3813_v29 = vld [vmem:[%s4008_s2] sm:$0xff] }
 0x8d1   :  { %v1896_v33 = vsel %vm66_vm0, %v3706_v24, 0.0  ;;  %v1878_v41 = vsub.f32 %v1846_v37, %v1868_v16 }
 0x8d2   :  { %3008 = vpow2.f32 %v1882_v31  ;;  %v1888_v30 = vmul.f32 1.442695, %v1876_v32  ;;  %1897 = vadd.xlane.f32.xlu2 %v1896_v33  ;;  %v2809_v31 = vld [vmem:[%s4020_s14 + $0x20] sm:$0xff]  ;;  %v2574_v33 = vld [vmem:[%s4008_s2 + $0x8] sm:$0xff] }
 0x8d3   :  { %v1892_v52 = vmul.f32 1.442695, %v1878_v41  ;;  %v2781_v32 = vld [vmem:[%s4015_s9 + $0x60] sm:$0xff]  ;;  %v2609_v16 = vsel %vm2601_vm15, %v2574_v33, 0.0 }
 0x8d4   :  { %3010 = vpow2.f32 %v1888_v30  ;;  %v2602_v30 = vsel %vm2601_vm15, %v3813_v29, 0.0 }
 0x8d7   :  { %v1865_v54 = vpop.xlane.xlu2 %1864  ;;  %v1856_v35 = vpop.xlane.xlu0 %1855 }
 0x8d8   :  { %v3710_v27 = vpop.eup %3008  ;;  %v1877_v36 = vsub.f32 %v1845_v11, %v1865_v54  ;;  %v1874_v38 = vsub.f32 %v1842_v48, %v1856_v35  ;;  %v2771_v48 = vld [vmem:[%s4014_s8 + $0x30] sm:$0xff]  ;;  %v2603_v54 = vrot.slane %v2602_v30, 4 }
 0x8d9   :  { %v1899_v40 = vsel %vm66_vm0, %v3710_v27, 0.0  ;;  %v2779_v11 = vld [vmem:[%s4016_s10 + $0x50] sm:$0xff] }
 0x8da   :  { %v3714_v62 = vpop.eup %3010  ;;  %v1890_v45 = vmul.f32 1.442695, %v1877_v36  ;;  %v1884_v46 = vmul.f32 1.442695, %v1874_v38  ;;  %1900 = vadd.xlane.f32.xlu0 %v1899_v40  ;;  %v2811_v35 = vld [vmem:[%s4020_s14 + $0x30] sm:$0xff]  ;;  %v2610_v36 = vrot.slane %v2609_v16, 4  ;;  %v2604_v41 = vadd.f32 %v2603_v54, %v2602_v30 }
 0x8db   :  { %v1908_v47 = vsel %vm66_vm0, %v3714_v62, 0.0  ;;  %v2812_v38 = vld [vmem:[%s4020_s14 + $0x38] sm:$0xff]  ;;  %v2786_v40 = vld [vmem:[%s4016_s10 + $0x68] sm:$0xff] }
 0x8dc   :  { %3012 = vpow2.f32 %v1890_v45  ;;  %1909 = vadd.xlane.f32.xlu1 %v1908_v47  ;;  %v2611_v47 = vadd.f32 %v2610_v36, %v2609_v16 }
 0x8dd   :  { %3014 = vpow2.f32 %v1884_v46 }
 0x8de   :  { %v1859_v55 = vpop.xlane.xlu1 %1858  ;;  %3016 = vpow2.f32 %v1892_v52  ;;  %v2605_v52 = vrot.slane %v2604_v41, 2 }
 0x8df   :  { %v1875_v57 = vsub.f32 %v1843_v53, %v1859_v55  ;;  %v1871_v60 = vpop.xlane.xlu0 %1870  ;;  %v2777_v53 = vld [vmem:[%s4016_s10 + $0x40] sm:$0xff] }
 0x8e0   :  { %v1879_v63 = vsub.f32 %v1847_v18, %v1871_v60  ;;  %v2803_v18 = vld [vmem:[%s4018_s12 + $0x70] sm:$0xff]  ;;  %v2785_v55 = vld [vmem:[%s4016_s10 + $0x60] sm:$0xff]  ;;  %v2782_v60 = vld [vmem:[%s4015_s9 + $0x68] sm:$0xff] }
 0x8e1   :  { %v1886_v59 = vmul.f32 1.442695, %v1875_v57  ;;  %v2612_v57 = vrot.slane %v2611_v47, 2 }
 0x8e2   :  { %v3718_v1 = vpop.eup %3012  ;;  %v1894_v17 = vmul.f32 1.442695, %v1879_v63  ;;  %v2606_v63 = vadd.f32 %v2605_v52, %v2604_v41 }
 0x8e3   :  { %v3720_v0 = vpop.eup %3014  ;;  %3018 = vpow2.f32 %v1886_v59  ;;  %v1911_v2 = vsel %vm66_vm0, %v3718_v1, 0.0  ;;  %v2784_v59 = vld [vmem:[%s4015_s9 + $0x78] sm:$0xff] }
 0x8e4   :  { %1912 = vadd.xlane.f32.xlu2 %v1911_v2  ;;  %v1902_v44 = vsel %vm66_vm0, %v3720_v0, 0.0  ;;  %v3726_v4 = vpop.eup %3016  ;;  %3020 = vpow2.f32 %v1894_v17 }
 0x8e5   :  { %1903 = vadd.xlane.f32.xlu1 %v1902_v44  ;;  %v1914_v37 = vsel %vm66_vm0, %v3726_v4, 0.0  ;;  %v2613_v44 = vadd.f32 %v2612_v57, %v2611_v47 }
 0x8e9   :  { %v3728_v5 = vpop.eup %3018 }
 0x8ea   :  { %v1905_v28 = vsel %vm66_vm0, %v3728_v5, 0.0  ;;  %v3737_v58 = vpop.eup %3020 }
 0x8eb   :  { %v1917_v7 = vsel %vm66_vm0, %v3737_v58, 0.0 }
 0x8ec   :  { %1906 = vadd.xlane.f32.xlu2 %v1905_v28 }
 0x8ed   :  { %1915 = vadd.xlane.f32.xlu1 %v1914_v37 }
 0x8ee   :  { %1493 = vperm.xlu0 %2923, %v2763_v6   ;;  %v2607_v6 = vrot.slane %v2606_v63, 1 }
 0x8f2   :  { %v1484_v45 = vpop.permute.xlu0 %1483 }
 0x8f4   :  { %1918 = vadd.xlane.f32.xlu2 %v1917_v7  ;;  %v2783_v7 = vld [vmem:[%s4015_s9 + $0x70] sm:$0xff] }
 0x8f6   :  { %2044 = vperm.xlu0 %2923, %v2769_v51   ;;  %v2614_v51 = vrot.slane %v2613_v44, 1 }
 0x8fe   :  { %2049 = vperm.xlu0 %2923, %v2770_v43   ;;  %v2787_v43 = vld [vmem:[%s4016_s10 + $0x70] sm:$0xff] }
 0x906   :  { %1498 = vperm.xlu1 %2924, %v2764_v8   ;;  %2059 = vperm.xlu0 %2923, %v2772_v9   ;;  %v2608_v8 = vadd.f32 %v2607_v6, %v2606_v63 }
 0x90c   :  { %1488 = vperm.xlu2 %2925, %v2762_v10   ;;  %v1578_v10 = vpop.f32.mrf.mxu3 }
 0x90e   :  { %2054 = vperm.xlu1 %2924, %v2771_v48   ;;  %2190 = vperm.xlu0 %2923, %v2779_v11   ;;  %v2615_v11 = vadd.f32 %v2614_v51, %v2613_v44 }
 0x914   :  { %2166 = vperm.xlu2 %2925, %v2775_v12  }
 0x916   :  { %2171 = vperm.xlu1 %2924, %v2776_v49   ;;  %2161 = vperm.xlu0 %2923, %v2774_v13   ;;  %v2616_v49 = vmax.f32 %v2608_v8, 1e-09 }
 0x91c   :  { %2195 = vperm.xlu2 %2925, %v2780_v14  }
 0x91e   :  { %2156 = vperm.xlu1 %2924, %v2773_v15   ;;  %2236 = vperm.xlu0 %2923, %v2803_v18   ;;  %v2617_v18 = vmax.f32 %v2615_v11, 1e-09 }
 0x924   :  { %2180 = vperm.xlu2 %2925, %v2777_v53   ;;  %v2788_v53 = vld [vmem:[%s4016_s10 + $0x78] sm:$0xff] }
 0x926   :  { %2185 = vperm.xlu1 %2924, %v2778_v25   ;;  %2231 = vperm.xlu0 %2923, %v2802_v61  }
 0x92c   :  { %2241 = vperm.xlu2 %2925, %v2804_v3  }
 0x92e   :  { %2226 = vperm.xlu1 %2924, %v2801_v39   ;;  %2206 = vperm.xlu0 %2923, %v2797_v20   ;;  %v1580_v39 = vpop.f32.mrf.mxu3 }
 0x934   :  { %2216 = vperm.xlu2 %2925, %v2799_v22  }
 0x936   :  { %2221 = vperm.xlu1 %2924, %v2800_v23   ;;  %2388 = vperm.xlu0 %2923, %v2810_v42   ;;  %v1579_v23 = vadd.f32 %v1578_v10, %v1484_v45 }
 0x938   :  { %v1592_v54 = vpack.c.bf16 %v1579_v23, %v1579_v23 }
 0x93c   :  { %2211 = vperm.xlu2 %2925, %v2798_v26  }
 0x93e   :  { %2383 = vperm.xlu1 %2924, %v2809_v31   ;;  %2495 = vperm.xlu0 %2923, %v2781_v32  }
 0x944   :  { %2393 = vperm.xlu2 %2925, %v2811_v35  }
 0x945   :  { %v1898_v46 = vpop.xlane.xlu2 %1897 }
 0x946   :  { %2398 = vperm.xlu1 %2924, %v2812_v38   ;;  %2524 = vperm.xlu0 %2923, %v2786_v40   ;;  %3022 = vrcp.f32 %v1898_v46 }
 0x94c   :  { %2519 = vperm.xlu2 %2925, %v2785_v55   ;;  %v3023_v17 = vpop.eup %3022 }
 0x94d   :  { %v1901_v2 = vpop.xlane.xlu0 %1900  ;;  %v1928_v37 = vmul.f32 %v3023_v17, %v3706_v24 }
 0x94e   :  { %2500 = vperm.xlu1 %2924, %v2782_v60   ;;  %3024 = vrcp.f32 %v1901_v2  ;;  %2510 = vperm.xlu0 %2923, %v2784_v59  }
 0x94f   :  { %v1910_v28 = vpop.xlane.xlu1 %1909  ;;  %v1936_v12 = vpack.c.bf16 %v1928_v37, %v1928_v37 }
 0x950   :  { %3026 = vrcp.f32 %v1910_v28 }
 0x951   :  { %v1946_v25 = vunpack.c.l.b16 %v1936_v12 }
 0x954   :  { %v3025_v9 = vpop.eup %3024  ;;  %2505 = vperm.xlu2 %2925, %v2783_v7  }
 0x955   :  { %v1929_v48 = vmul.f32 %v3025_v9, %v3710_v27 }
 0x956   :  { %2529 = vperm.xlu1 %2924, %v2787_v43   ;;  %2582 = vperm.xlu0 %2923, %v2574_v33   ;;  %v3027_v14 = vpop.eup %3026 }
 0x957   :  { %v1913_v24 = vpop.xlane.xlu2 %1912  ;;  %v1937_v13 = vpack.c.bf16 %v1929_v48, %v1929_v48  ;;  %v1932_v27 = vmul.f32 %v3027_v14, %v3714_v62 }
 0x958   :  { %3028 = vrcp.f32 %v1913_v24  ;;  %v1904_v15 = vpop.xlane.xlu1 %1903 }
 0x959   :  { %v1947_v61 = vunpack.c.l.b16 %v1937_v13  ;;  %3030 = vrcp.f32 %v1904_v15  ;;  %v1940_v31 = vpack.c.bf16 %v1932_v27, %v1932_v27  ;;  %v2911_v27 = vld [vmem:[%s4013_s7 + $0x10] sm:$0xff] }
 0x95a   :  { %3032 = vrcp.f32 %v2616_v49 }
 0x95b   :  { %v1948_v3 = vpack.c.b16 %v1947_v61, %v1946_v25  ;;  %3034 = vrcp.f32 %v2617_v18  ;;  %v1994_v36 = vunpack.c.l.b16 %v1940_v31 }
 0x95c   :  { %2534 = vperm.xlu2 %2925, %v2788_v53  }
 0x95d   :  { %v1953_v20 = vsel %vm66_vm0, %v1948_v3, 0 }
 0x95e   :  { %v3029_v22 = vpop.eup %3028  ;;  %2577 = vperm.xlu1 %2924, %v3813_v29   ;;  %1962 = vmatpush.bf16.xpose.msra.mxu2 %v1953_v20 }
 0x95f   :  { %v1933_v42 = vmul.f32 %v3029_v22, %v3718_v1  ;;  %v1907_v26 = vpop.xlane.xlu2 %1906  ;;  %v3031_v32 = vpop.eup %3030 }
 0x960   :  { %3036 = vrcp.f32 %v1907_v26  ;;  %v1916_v33 = vpop.xlane.xlu1 %1915  ;;  %v3033_v62 = vpop.eup %3032  ;;  %v1930_v35 = vmul.f32 %v3031_v32, %v3720_v0 }
 0x961   :  { %v1941_v30 = vpack.c.bf16 %v1933_v42, %v1933_v42  ;;  %3038 = vrcp.f32 %v1916_v33  ;;  %v3035_v16 = vpop.eup %3034  ;;  %v1583_v1 = vpop.f32.mrf.mxu3 }
 0x962   :  { %v1494_v41 = vpop.permute.xlu0 %1493  ;;  %v1938_v52 = vpack.c.bf16 %v1930_v35, %v1930_v35 }
 0x963   :  { %v1995_v38 = vunpack.c.l.b16 %v1941_v30  ;;  %v1584_v0 = vadd.f32 %v1583_v1, %v1494_v41 }
 0x964   :  { %2622 = vperm.xlu2 %2925, %v3033_v62   ;;  %v1970_v59 = vunpack.c.l.b16 %v1938_v52 }
 0x965   :  { %2847 = vmatmul.msk.bf16.vlgmr.msra.gmra.mxu2 %vm66_vm0, %v1592_v54  ;;  %v1996_v29 = vpack.c.b16 %v1995_v38, %v1994_v36  ;;  %v1594_v2 = vpack.c.bf16 %v1584_v0, %v1584_v0 }
 0x966   :  { %v3037_v40 = vpop.eup %3036  ;;  %2627 = vperm.xlu1 %2924, %v3035_v16  }
 0x967   :  { %v1931_v45 = vmul.f32 %v3037_v40, %v3728_v5  ;;  %v1919_v46 = vpop.xlane.xlu2 %1918  ;;  %v2001_v47 = vsel %vm66_vm0, %v1996_v29, 0  ;;  %v3039_v55 = vpop.eup %3038 }
 0x968   :  { %3040 = vrcp.f32 %v1919_v46  ;;  %2010 = vmatpush.bf16.xpose.msrb.mxu1 %v2001_v47  ;;  %v1934_v60 = vmul.f32 %v3039_v55, %v3726_v4 }
 0x969   :  { %v1939_v57 = vpack.c.bf16 %v1931_v45, %v1931_v45  ;;  %v1585_v48 = vpop.f32.mrf.mxu3 }
 0x96a   :  { %v1942_v37 = vpack.c.bf16 %v1934_v60, %v1934_v60  ;;  %v2045_v22 = vpop.permute.xlu0 %2044 }
 0x96b   :  { %v1971_v63 = vunpack.c.l.b16 %v1939_v57 }
 0x96c   :  { %v2018_v43 = vunpack.c.l.b16 %v1942_v37 }
 0x96d   :  { %v1972_v44 = vpack.c.b16 %v1971_v63, %v1970_v59 }
 0x96e   :  { %v3041_v17 = vpop.eup %3040 }
 0x96f   :  { %v1935_v28 = vmul.f32 %v3041_v17, %v3737_v58  ;;  %v1489_v6 = vpop.permute.xlu2 %1488  ;;  %2849 = vmatmul.msk.bf16.vlgmr.msrb.gmra.mxu1 %vm66_vm0, %v1594_v2  ;;  %v1977_v5 = vsel %vm66_vm0, %v1972_v44, 0 }
 0x970   :  { %1986 = vmatpush.bf16.xpose.msrb.mxu0 %v1977_v5  ;;  %v1581_v7 = vadd.f32 %v1580_v39, %v1489_v6  ;;  %v2912_v39 = vld [vmem:[%s4013_s7 + $0x18] sm:$0xff] }
 0x971   :  { %v1943_v51 = vpack.c.bf16 %v1935_v28, %v1935_v28 }
 0x972   :  { %v1593_v9 = vpack.c.bf16 %v1581_v7, %v1581_v7  ;;  %v2050_v42 = vpop.permute.xlu0 %2049 }
 0x973   :  { %v2019_v8 = vunpack.c.l.b16 %v1943_v51 }
 0x975   :  { %v2020_v4 = vpack.c.b16 %v2019_v8, %v2018_v43 }
 0x977   :  { %2848 = vmatmul.msk.bf16.vlgmr.msrb.gmra.mxu0 %vm66_vm0, %v1593_v9  ;;  %v2025_v10 = vsel %vm66_vm0, %v2020_v4, 0 }
 0x978   :  { %v1499_v11 = vpop.permute.xlu1 %1498  ;;  %2034 = vmatpush.bf16.xpose.msrb.mxu2 %v2025_v10 }
 0x979   :  { %v1586_v58 = vadd.f32 %v1585_v48, %v1499_v11 }
 0x97a   :  { %v2060_v40 = vpop.permute.xlu0 %2059 }
 0x97b   :  { %v1595_v12 = vpack.c.bf16 %v1586_v58, %v1586_v58 }
 0x97f   :  { %2850 = vmatmul.msk.bf16.vlgmr.msrb.gmra.mxu2 %vm66_vm0, %v1595_v12 }
 0x980   :  { %v2055_v32 = vpop.permute.xlu1 %2054 }
 0x9e8   :  { %v1964_v24 = vpop.f32.mrf.mxu2 }
 0x9ec   :  { %v2012_v49 = vpop.f32.mrf.mxu1 }
 0x9f0   :  { %v1966_v13 = vpop.f32.mrf.mxu2 }
 0x9f4   :  { %v1988_v14 = vpop.f32.mrf.mxu0  ;;  %v2014_v15 = vpop.f32.mrf.mxu1 }
 0x9f5   :  { %v2040_v61 = vpack.c.bf16 %v1988_v14, %v1964_v24  ;;  %v2167_v24 = vpop.permute.xlu2 %2166  ;;  %v2191_v15 = vpop.permute.xlu0 %2190 }
 0x9fc   :  { %v1990_v18 = vpop.f32.mrf.mxu0 }
 0xa02   :  { %v2036_v53 = vpop.f32.mrf.mxu2 }
 0xa03   :  { %v2041_v25 = vpack.c.bf16 %v2036_v53, %v2012_v49  ;;  %v2172_v49 = vpop.permute.xlu1 %2171 }
 0xa05   :  { %2084 = vmatpush.bf16.msra.mxu0 %v2041_v25  ;;  %v2196_v25 = vpop.permute.xlu2 %2195 }
 0xa09   :  { %2085 = vmatpush.bf16.msra.mxu0 %v2040_v61 }
 0xa0a   :  { %v2038_v3 = vpop.f32.mrf.mxu2 }
 0xa0b   :  { %v2157_v61 = vpop.permute.xlu1 %2156 }
 0xa0c   :  { %2859 = vmatmul.msk.bf16.vlgmr.msra.gmra.mxu0 %vm341_vm5, %v2911_v27 }
 0xa1c   :  { %2860 = vmatmul.msk.bf16.gmra.mxu0 %vm341_vm5, %v2912_v39 }
 0xa89   :  { %v2087_v20 = vpop.f32.mrf.mxu0 }
 0xa8a   :  { %v2088_v31 = vadd.f32 %v2087_v20, %v2045_v22 }
 0xa8c   :  { %v3881_v16 = vadd.f32 %v2088_v31, %v3651_v21 }
 0xa8e   :  { %v2115_v36 = vmul.f32 %v3881_v16, %v3881_v16 }
 0xa90   :  { %v2119_v46 = vsel %vm66_vm0, %v2115_v36, 0.0 }
 0xa91   :  { %v2089_v23 = vpop.f32.mrf.mxu0 }
 0xa92   :  { %v2090_v26 = vadd.f32 %v2089_v23, %v2050_v42 }
 0xa94   :  { %v3878_v62 = vadd.f32 %v2090_v26, %v3653_v19  ;;  %v2101_v19 = vsel %vm66_vm0, %v3881_v16, 0.0 }
 0xa96   :  { %v2116_v35 = vmul.f32 %v3878_v62, %v3878_v62  ;;  %v2102_v38 = vsel %vm66_vm0, %v3878_v62, 0.0 }
 0xa97   :  { %v2103_v45 = vadd.f32 %v2102_v38, %v2101_v19  ;;  %v2181_v19 = vpop.permute.xlu2 %2180 }
 0xa98   :  { %v2120_v21 = vsel %vm66_vm0, %v2116_v35, 0.0 }
 0xa99   :  { %v2092_v33 = vpop.f32.mrf.mxu0  ;;  %v2121_v55 = vadd.f32 %v2120_v21, %v2119_v46  ;;  %v2915_v46 = vld [vmem:[%s4017_s11 + $0x30] sm:$0xff] }
 0xa9a   :  { %v2093_v30 = vadd.f32 %v2092_v33, %v2055_v32 }
 0xa9c   :  { %v2099_v54 = vadd.f32 %v2093_v30, %v3645_v50  ;;  %v2162_v30 = vpop.permute.xlu0 %2161 }
 0xa9e   :  { %v2117_v29 = vmul.f32 %v2099_v54, %v2099_v54  ;;  %v2104_v41 = vsel %vm66_vm0, %v2099_v54, 0.0 }
 0xa9f   :  { %v2105_v0 = vadd.f32 %v2104_v41, %v2103_v45  ;;  %v2914_v45 = vld [vmem:[%s4017_s11 + $0x28] sm:$0xff] }
 0xaa0   :  { %v2122_v47 = vsel %vm66_vm0, %v2117_v29, 0.0 }
 0xaa1   :  { %v2094_v1 = vpop.f32.mrf.mxu0  ;;  %v2123_v59 = vadd.f32 %v2122_v47, %v2121_v55  ;;  %v2916_v47 = vld [vmem:[%s4017_s11 + $0x38] sm:$0xff] }
 0xaa2   :  { %v2095_v50 = vadd.f32 %v2094_v1, %v2060_v40 }
 0xaa4   :  { %v2100_v52 = vadd.f32 %v2095_v50, %v3647_v34  ;;  %v2913_v50 = vld [vmem:[%s4017_s11 + $0x20] sm:$0xff] }
 0xaa6   :  { %v2106_v57 = vsel %vm66_vm0, %v2100_v52, 0.0  ;;  %v2118_v60 = vmul.f32 %v2100_v52, %v2100_v52 }
 0xaa7   :  { %v2107_v63 = vadd.f32 %v2106_v57, %v2105_v0 }
 0xaa8   :  { %v2124_v2 = vsel %vm66_vm0, %v2118_v60, 0.0  ;;  %v2242_v60 = vpop.permute.xlu2 %2241 }
 0xaa9   :  { %v2108_v44 = vrot.slane %v2107_v63, 4  ;;  %v2125_v17 = vadd.f32 %v2124_v2, %v2123_v59  ;;  %v2237_v59 = vpop.permute.xlu0 %2236 }
 0xaab   :  { %v2109_v28 = vadd.f32 %v2108_v44, %v2107_v63  ;;  %v2126_v6 = vrot.slane %v2125_v17, 4 }
 0xaad   :  { %v2110_v5 = vrot.slane %v2109_v28, 2  ;;  %v2127_v37 = vadd.f32 %v2126_v6, %v2125_v17 }
 0xaaf   :  { %v2111_v7 = vadd.f32 %v2110_v5, %v2109_v28  ;;  %v2128_v51 = vrot.slane %v2127_v37, 2 }
 0xab0   :  { %v2217_v44 = vpop.permute.xlu2 %2216 }
 0xab1   :  { %v2112_v43 = vrot.slane %v2111_v7, 1  ;;  %v2129_v8 = vadd.f32 %v2128_v51, %v2127_v37  ;;  %v2232_v28 = vpop.permute.xlu0 %2231 }
 0xab3   :  { %v2113_v34 = vadd.f32 %v2112_v43, %v2111_v7  ;;  %v2130_v9 = vrot.slane %v2129_v8, 1 }
 0xab5   :  { %v2114_v4 = vmul.f32 %v2113_v34, %v3251_v56  ;;  %v2131_v10 = vadd.f32 %v2130_v9, %v2129_v8 }
 0xab7   :  { %v2132_v48 = vmul.f32 %v2131_v10, %v3251_v56  ;;  %v2133_v11 = vmul.f32 %v2114_v4, %v2114_v4  ;;  %v2138_v39 = vsub.f32 %v2100_v52, %v2114_v4  ;;  %v2137_v20 = vsub.f32 %v2099_v54, %v2114_v4  ;;  %v2186_v54 = vpop.permute.xlu1 %2185 }
 0xab8   :  { %v2135_v22 = vsub.f32 %v3881_v16, %v2114_v4  ;;  %v2136_v23 = vsub.f32 %v3878_v62, %v2114_v4  ;;  %v2212_v4 = vpop.permute.xlu2 %2211 }
 0xab9   :  { %v2134_v58 = vsub.f32 %v2132_v48, %v2133_v11 }
 0xabb   :  { %v2139_v12 = vadd.f32 1e-05, %v2134_v58 }
 0xabd   :  { %3042 = vrsqrt.f32 %v2139_v12  ;;  %vm2146_vm2 = vweird.f32 %v2139_v12 }
 0xabf   :  { %v2227_v2 = vpop.permute.xlu1 %2226 }
 0xac3   :  { %v3043_v13 = vpop.eup %3042 }
 0xac4   :  { %v2141_v14 = vmul.f32 %v3043_v13, %v2139_v12  ;;  %vm2147_vm1 = vweird.f32 %v3043_v13  ;;  %v2207_v12 = vpop.permute.xlu0 %2206 }
 0xac5   :  { %vm2148_vm3 = vmor %vm2146_vm2, %vm2147_vm1 }
 0xac6   :  { %v2142_v18 = vmul.f32 %v3043_v13, %v2141_v14 }
 0xac7   :  { %v2222_v37 = vpop.permute.xlu1 %2221 }
 0xac8   :  { %v2143_v53 = vmul.f32 0.5, %v2142_v18 }
 0xaca   :  { %v2144_v27 = vsub.f32 1.5, %v2143_v53 }
 0xacc   :  { %v2145_v3 = vmul.f32 %v3043_v13, %v2144_v27 }
 0xace   :  { %v2149_v42 = vsel %vm2148_vm3, %v3043_v13, %v2145_v3 }
 0xacf   :  { %v2153_v26 = vmul.f32 %v2149_v42, %v2138_v39  ;;  %v2152_v31 = vmul.f32 %v2149_v42, %v2137_v20  ;;  %v2150_v32 = vmul.f32 %v2149_v42, %v2135_v22  ;;  %v2151_v33 = vmul.f32 %v2149_v42, %v2136_v23 }
 0xad1   :  { %v2177_v35 = vmul.f32 %v2172_v49, %v2153_v26  ;;  %v2176_v36 = vmul.f32 %v2167_v24, %v2152_v31  ;;  %v2174_v38 = vmul.f32 %v2157_v61, %v2150_v32  ;;  %v2175_v29 = vmul.f32 %v2162_v30, %v2151_v33 }
 0xad3   :  { %v3903_v40 = vadd.f32 %v2191_v15, %v2176_v36  ;;  %v3905_v1 = vadd.f32 %v2196_v25, %v2177_v35  ;;  %v3909_v62 = vadd.f32 %v2181_v19, %v2174_v38  ;;  %v3911_v21 = vadd.f32 %v2186_v54, %v2175_v29 }
 0xad5   :  { %v2203_v16 = vpack.c.bf16 %v3905_v1, %v3903_v40  ;;  %v2202_v41 = vpack.c.bf16 %v3911_v21, %v3909_v62 }
 0xad7   :  { %2282 = vmatpush.bf16.msra.mxu1 %v2203_v16 }
 0xadb   :  { %2283 = vmatpush.bf16.msra.mxu1 %v2202_v41 }
 0xade   :  { %2877 = vmatmul.msk.bf16.vlgmr.msra.gmra.mxu1 %vm341_vm5, %v2913_v50 }
 0xaee   :  { %2878 = vmatmul.msk.bf16.gmra.mxu1 %vm341_vm5, %v2914_v45 }
 0xafe   :  { %2879 = vmatmul.msk.bf16.gmra.mxu1 %vm341_vm5, %v2915_v46 }
 0xb0e   :  { %2880 = vmatmul.msk.bf16.gmra.mxu1 %vm341_vm5, %v2916_v47 }
 0xb5b   :  { %v2285_v52 = vpop.f32.mrf.mxu1 }
 0xb5c   :  { %v3946_v49 = vadd.f32 %v2285_v52, %v2207_v12 }
 0xb5e   :  { %v2313_v3 = vmul.f32 0.044715, %v3946_v49 }
 0xb60   :  { %v2321_v33 = vmul.f32 %v2313_v3, %v3946_v49 }
 0xb62   :  { %v2329_v45 = vmul.f32 %v2321_v33, %v3946_v49 }
 0xb63   :  { %v2287_v55 = vpop.f32.mrf.mxu1 }
 0xb64   :  { %v3941_v10 = vadd.f32 %v2287_v55, %v2212_v4 }
 0xb66   :  { %v2314_v15 = vmul.f32 0.044715, %v3941_v10 }
 0xb68   :  { %v2322_v23 = vmul.f32 %v2314_v15, %v3941_v10 }
 0xb6a   :  { %v2330_v54 = vmul.f32 %v2322_v23, %v3941_v10 }
 0xb6b   :  { %v2290_v0 = vpop.f32.mrf.mxu1 }
 0xb6c   :  { %v3939_v34 = vadd.f32 %v2290_v0, %v2217_v44  ;;  %v2338_v52 = vadd.f32 %v2330_v54, %v3941_v10  ;;  %v2337_v0 = vadd.f32 %v2329_v45, %v3946_v49 }
 0xb6e   :  { %v2315_v13 = vmul.f32 0.044715, %v3939_v34  ;;  %v2307_v3 = vmul.f32 0.5, %v3939_v34 }
 0xb70   :  { %v2323_v39 = vmul.f32 %v2315_v13, %v3939_v34 }
 0xb72   :  { %v2331_v36 = vmul.f32 %v2323_v39, %v3939_v34 }
 0xb73   :  { %v2292_v57 = vpop.f32.mrf.mxu1 }
 0xb74   :  { %v3935_v7 = vadd.f32 %v2292_v57, %v2222_v37  ;;  %v2339_v50 = vadd.f32 %v2331_v36, %v3939_v34  ;;  %v2918_v34 = vld [vmem:[%s4019_s13 + $0x18] sm:$0xff] }
 0xb76   :  { %v2316_v48 = vmul.f32 0.044715, %v3935_v7  ;;  %v2347_v55 = vmul.f32 0.7978846, %v2339_v50 }
 0xb78   :  { %v2324_v18 = vmul.f32 %v2316_v48, %v3935_v7 }
 0xb7a   :  { %v2332_v31 = vmul.f32 %v2324_v18, %v3935_v7 }
 0xb7b   :  { %v2295_v63 = vpop.f32.mrf.mxu1 }
 0xb7c   :  { %v3933_v5 = vadd.f32 %v2295_v63, %v2227_v2  ;;  %v2340_v19 = vadd.f32 %v2332_v31, %v3935_v7  ;;  %v2345_v63 = vmul.f32 0.7978846, %v2337_v0 }
 0xb7e   :  { %v2317_v43 = vmul.f32 0.044715, %v3933_v5  ;;  %v2348_v47 = vmul.f32 0.7978846, %v2340_v19  ;;  %v2309_v13 = vmul.f32 0.5, %v3933_v5 }
 0xb80   :  { %v2325_v24 = vmul.f32 %v2317_v43, %v3933_v5 }
 0xb82   :  { %v2333_v27 = vmul.f32 %v2325_v24, %v3933_v5 }
 0xb83   :  { %v2297_v17 = vpop.f32.mrf.mxu1 }
 0xb84   :  { %v3931_v6 = vadd.f32 %v2297_v17, %v2232_v28  ;;  %v2341_v32 = vadd.f32 %v2333_v27, %v3933_v5 }
 0xb86   :  { %v2318_v51 = vmul.f32 0.044715, %v3931_v6  ;;  %v2349_v16 = vmul.f32 0.7978846, %v2341_v32 }
 0xb88   :  { %v2326_v11 = vmul.f32 %v2318_v51, %v3931_v6 }
 0xb8a   :  { %v2334_v25 = vmul.f32 %v2326_v11, %v3931_v6  ;;  %v2310_v11 = vmul.f32 0.5, %v3931_v6 }
 0xb8b   :  { %v2300_v8 = vpop.f32.mrf.mxu1 }
 0xb8c   :  { %v2301_v9 = vadd.f32 %v2300_v8, %v2237_v59  ;;  %v2342_v26 = vadd.f32 %v2334_v25, %v3931_v6 }
 0xb8e   :  { %v2319_v58 = vmul.f32 0.044715, %v2301_v9  ;;  %v2350_v29 = vmul.f32 0.7978846, %v2342_v26  ;;  %v2311_v28 = vmul.f32 0.5, %v2301_v9 }
 0xb90   :  { %v2327_v14 = vmul.f32 %v2319_v58, %v2301_v9 }
 0xb92   :  { %v2335_v53 = vmul.f32 %v2327_v14, %v2301_v9 }
 0xb93   :  { %v2302_v61 = vpop.f32.mrf.mxu1 }
 0xb94   :  { %v2343_v20 = vadd.f32 %v2335_v53, %v2301_v9  ;;  %v2303_v22 = vadd.f32 %v2302_v61, %v2242_v60  ;;  %v2346_v60 = vmul.f32 0.7978846, %v2338_v52  ;;  %v2308_v9 = vmul.f32 0.5, %v3935_v7  ;;  %v2917_v7 = vld [vmem:[%s4019_s13 + $0x10] sm:$0xff]  ;;  %s3092_s13 = smov [#allocation2]  }
 0xb95   :  { %s2644_s1 = sshll.u32 %s3092_s13, 4  ;;  %s2645_s1 = int_to_ptr.vmem [resolvable:$true] %s2644_s1 }
 0xb96   :  { %v2320_v42 = vmul.f32 0.044715, %v2303_v22  ;;  %v2351_v30 = vmul.f32 0.7978846, %v2343_v20  ;;  %v2312_v37 = vmul.f32 0.5, %v2303_v22 }
 0xb98   :  { %v2328_v35 = vmul.f32 %v2320_v42, %v2303_v22  ;;  %3044 = vtanh.f32 %v2351_v30  ;;  %v2305_v42 = vmul.f32 0.5, %v3946_v49  ;;  %v2389_v49 = vpop.permute.xlu0 %2388 }
 0xb99   :  { %3046 = vtanh.f32 %v2350_v29 }
 0xb9a   :  { %v2336_v38 = vmul.f32 %v2328_v35, %v2303_v22  ;;  %3048 = vtanh.f32 %v2349_v16  ;;  %v2384_v35 = vpop.permute.xlu1 %2383 }
 0xb9c   :  { %v2344_v41 = vadd.f32 %v2336_v38, %v2303_v22  ;;  %v2306_v22 = vmul.f32 0.5, %v3941_v10  ;;  %v2394_v38 = vpop.permute.xlu2 %2393 }
 0xb9e   :  { %v2352_v46 = vmul.f32 0.7978846, %v2344_v41  ;;  %v3045_v57 = vpop.eup %3044 }
 0xb9f   :  { %v3047_v59 = vpop.eup %3046  ;;  %v2367_v44 = vadd.f32 1.0, %v3045_v57 }
 0xba0   :  { %3050 = vtanh.f32 %v2352_v46  ;;  %v3049_v2 = vpop.eup %3048  ;;  %v2366_v43 = vadd.f32 1.0, %v3047_v59 }
 0xba1   :  { %3052 = vtanh.f32 %v2348_v47  ;;  %v2375_v4 = vmul.f32 %v2367_v44, %v2311_v28  ;;  %v2365_v58 = vadd.f32 1.0, %v3049_v2 }
 0xba2   :  { %3054 = vtanh.f32 %v2347_v55  ;;  %v2374_v14 = vmul.f32 %v2366_v43, %v2310_v11  ;;  %v2399_v52 = vpop.permute.xlu1 %2398 }
 0xba3   :  { %3056 = vtanh.f32 %v2346_v60  ;;  %v2373_v53 = vmul.f32 %v2365_v58, %v2309_v13 }
 0xba4   :  { %3058 = vtanh.f32 %v2345_v63 }
 0xba5   :  { %v2379_v27 = vpack.c.bf16 %v2374_v14, %v2373_v53 }
 0xba6   :  { %v3051_v17 = vpop.eup %3050 }
 0xba7   :  { %v2368_v51 = vadd.f32 1.0, %v3051_v17  ;;  %v3053_v8 = vpop.eup %3052 }
 0xba8   :  { %v3055_v12 = vpop.eup %3054  ;;  %v2364_v15 = vadd.f32 1.0, %v3053_v8 }
 0xba9   :  { %v2376_v48 = vmul.f32 %v2368_v51, %v2312_v37  ;;  %v3057_v18 = vpop.eup %3056  ;;  %v2363_v25 = vadd.f32 1.0, %v3055_v12 }
 0xbaa   :  { %v3059_v61 = vpop.eup %3058  ;;  %v2372_v39 = vmul.f32 %v2364_v15, %v2308_v9  ;;  %v2362_v20 = vadd.f32 1.0, %v3057_v18 }
 0xbab   :  { %v2380_v24 = vpack.c.bf16 %v2376_v48, %v2375_v4  ;;  %v2371_v6 = vmul.f32 %v2363_v25, %v2307_v3  ;;  %v2361_v23 = vadd.f32 1.0, %v3059_v61 }
 0xbac   :  { %v2370_v26 = vmul.f32 %v2362_v20, %v2306_v22 }
 0xbad   :  { %2421 = vmatpush.bf16.msra.mxu2 %v2380_v24  ;;  %v2378_v5 = vpack.c.bf16 %v2372_v39, %v2371_v6  ;;  %v2369_v31 = vmul.f32 %v2361_v23, %v2305_v42 }
 0xbaf   :  { %v2377_v32 = vpack.c.bf16 %v2370_v26, %v2369_v31 }
 0xbb1   :  { %2422 = vmatpush.bf16.msra.mxu2 %v2379_v27 }
 0xbb5   :  { %2423 = vmatpush.bf16.msra.mxu2 %v2378_v5 }
 0xbb9   :  { %2424 = vmatpush.bf16.msra.mxu2 %v2377_v32  ;;  %v2496_v32 = vpop.permute.xlu0 %2495 }
 0xbbc   :  { %2889 = vmatmul.msk.bf16.vlgmr.msra.gmra.mxu2 %vm1224_vm11, %v2917_v7 }
 0xbcc   :  { %2890 = vmatmul.msk.bf16.gmra.mxu2 %vm1224_vm11, %v2918_v34 }
 0xc3f   :  { %v2426_v10 = vpop.f32.mrf.mxu2 }
 0xc40   :  { %v2427_v36 = vadd.f32 %v2426_v10, %v2384_v35 }
 0xc42   :  { %v2436_v16 = vadd.f32 %v2427_v36, %v3909_v62  ;;  %v2525_v36 = vpop.permute.xlu0 %2524 }
 0xc44   :  { %v2454_v45 = vmul.f32 %v2436_v16, %v2436_v16  ;;  %v2440_v0 = vsel %vm66_vm0, %v2436_v16, 0.0 }
 0xc47   :  { %v2428_v33 = vpop.f32.mrf.mxu2 }
 0xc48   :  { %v2429_v30 = vadd.f32 %v2428_v33, %v2389_v49  ;;  %v2501_v49 = vpop.permute.xlu1 %2500 }
 0xc4a   :  { %v2437_v19 = vadd.f32 %v2429_v30, %v3911_v21 }
 0xc4c   :  { %v2455_v50 = vmul.f32 %v2437_v19, %v2437_v19  ;;  %v2441_v46 = vsel %vm66_vm0, %v2437_v19, 0.0 }
 0xc4d   :  { %v2442_v60 = vadd.f32 %v2441_v46, %v2440_v0 }
 0xc4e   :  { %v2459_v57 = vsel %vm66_vm0, %v2455_v50, 0.0 }
 0xc4f   :  { %v2431_v29 = vpop.f32.mrf.mxu2 }
 0xc50   :  { %v2432_v54 = vadd.f32 %v2431_v29, %v2394_v38 }
 0xc52   :  { %v3984_v41 = vadd.f32 %v2432_v54, %v3903_v40  ;;  %v2458_v40 = vsel %vm66_vm0, %v2454_v45, 0.0  ;;  %v2530_v45 = vpop.permute.xlu1 %2529 }
 0xc53   :  { %v2460_v2 = vadd.f32 %v2459_v57, %v2458_v40 }
 0xc54   :  { %v2456_v47 = vmul.f32 %v3984_v41, %v3984_v41  ;;  %v2443_v21 = vsel %vm66_vm0, %v3984_v41, 0.0 }
 0xc55   :  { %v2444_v44 = vadd.f32 %v2443_v21, %v2442_v60 }
 0xc56   :  { %v2461_v59 = vsel %vm66_vm0, %v2456_v47, 0.0 }
 0xc57   :  { %v2433_v55 = vpop.f32.mrf.mxu2  ;;  %v2462_v37 = vadd.f32 %v2461_v59, %v2460_v2 }
 0xc58   :  { %v2434_v62 = vadd.f32 %v2433_v55, %v2399_v52 }
 0xc5a   :  { %v2439_v63 = vadd.f32 %v2434_v62, %v3905_v1  ;;  %v2578_v21 = vpop.permute.xlu1 %2577 }
 0xc5c   :  { %v2445_v17 = vsel %vm66_vm0, %v2439_v63, 0.0  ;;  %v2457_v28 = vmul.f32 %v2439_v63, %v2439_v63 }
 0xc5d   :  { %v2446_v51 = vadd.f32 %v2445_v17, %v2444_v44 }
 0xc5e   :  { %v2463_v43 = vsel %vm66_vm0, %v2457_v28, 0.0 }
 0xc5f   :  { %v2447_v8 = vrot.slane %v2446_v51, 4  ;;  %v2464_v4 = vadd.f32 %v2463_v43, %v2462_v37 }
 0xc61   :  { %v2448_v48 = vadd.f32 %v2447_v8, %v2446_v51  ;;  %v2465_v11 = vrot.slane %v2464_v4, 4 }
 0xc63   :  { %v2449_v58 = vrot.slane %v2448_v48, 2  ;;  %v2466_v12 = vadd.f32 %v2465_v11, %v2464_v4 }
 0xc65   :  { %v2450_v24 = vadd.f32 %v2449_v58, %v2448_v48  ;;  %v2467_v13 = vrot.slane %v2466_v12, 2 }
 0xc67   :  { %v2451_v14 = vrot.slane %v2450_v24, 1  ;;  %v2468_v15 = vadd.f32 %v2467_v13, %v2466_v12 }
 0xc69   :  { %v2452_v1 = vadd.f32 %v2451_v14, %v2450_v24  ;;  %v2469_v18 = vrot.slane %v2468_v15, 1  ;;  %v2628_v24 = vpop.permute.xlu1 %2627 }
 0xc6b   :  { %v2453_v53 = vmul.f32 %v2452_v1, %v3251_v56  ;;  %v2470_v9 = vadd.f32 %v2469_v18, %v2468_v15 }
 0xc6d   :  { %v2471_v25 = vmul.f32 %v2470_v9, %v3251_v56  ;;  %v2472_v61 = vmul.f32 %v2453_v53, %v2453_v53  ;;  %v2474_v42 = vsub.f32 %v2436_v16, %v2453_v53  ;;  %v2475_v34 = vsub.f32 %v2437_v19, %v2453_v53  ;;  %v2520_v56 = vpop.permute.xlu2 %2519  ;;  %v2511_v19 = vpop.permute.xlu0 %2510 }
 0xc6e   :  { %v2476_v35 = vsub.f32 %v3984_v41, %v2453_v53  ;;  %v2477_v16 = vsub.f32 %v2439_v63, %v2453_v53 }
 0xc6f   :  { %v2473_v27 = vsub.f32 %v2471_v25, %v2472_v61 }
 0xc71   :  { %v2478_v3 = vadd.f32 1e-05, %v2473_v27 }
 0xc73   :  { %3060 = vrsqrt.f32 %v2478_v3  ;;  %vm2485_vm4 = vweird.f32 %v2478_v3 }
 0xc75   :  { %v2506_v54 = vpop.permute.xlu2 %2505  ;;  %v2583_v57 = vpop.permute.xlu0 %2582 }
 0xc79   :  { %v3061_v39 = vpop.eup %3060 }
 0xc7a   :  { %v2480_v20 = vmul.f32 %v3061_v39, %v2478_v3  ;;  %vm2486_vm0 = vweird.f32 %v3061_v39 }
 0xc7b   :  { %vm2487_vm6 = vmor %vm2485_vm4, %vm2486_vm0 }
 0xc7c   :  { %v2481_v6 = vmul.f32 %v3061_v39, %v2480_v20 }
 0xc7d   :  { %v2535_v55 = vpop.permute.xlu2 %2534 }
 0xc7e   :  { %v2482_v22 = vmul.f32 0.5, %v2481_v6 }
 0xc80   :  { %v2483_v23 = vsub.f32 1.5, %v2482_v22 }
 0xc82   :  { %v2484_v5 = vmul.f32 %v3061_v39, %v2483_v23 }
 0xc84   :  { %v2488_v26 = vsel %vm2487_vm6, %v3061_v39, %v2484_v5 }
 0xc85   :  { %v2489_v31 = vmul.f32 %v2488_v26, %v2474_v42  ;;  %v2490_v33 = vmul.f32 %v2488_v26, %v2475_v34  ;;  %v2491_v29 = vmul.f32 %v2488_v26, %v2476_v35  ;;  %v2492_v46 = vmul.f32 %v2488_v26, %v2477_v16  ;;  %v2623_v12 = vpop.permute.xlu2 %2622 }
 0xc87   :  { %v2513_v7 = vmul.f32 %v2496_v32, %v2489_v31  ;;  %v2514_v30 = vmul.f32 %v2501_v49, %v2490_v33  ;;  %v2515_v50 = vmul.f32 %v2506_v54, %v2491_v29  ;;  %v2516_v52 = vmul.f32 %v2511_v19, %v2492_v46 }
 0xc89   :  { %v2537_v10 = vadd.f32 %v2520_v56, %v2513_v7  ;;  %v2538_v38 = vadd.f32 %v2525_v36, %v2514_v30  ;;  %v2539_v47 = vadd.f32 %v2530_v45, %v2515_v50  ;;  %v2540_v0 = vadd.f32 %v2535_v55, %v2516_v52 }
 0xc8b   :  { %2541 = vxpose.xlu0.b32.start [1/4] (short) (narrow) %v2537_v10, 16 }
 0xc93   :  { %2542 = vxpose.xlu0.b32.cont [2/4] (short) (narrow) %v2538_v38, 16 }
 0xc9b   :  { %2543 = vxpose.xlu0.b32.cont [3/4] (short) (narrow) %v2539_v47, 16 }
 0xca3   :  { %2544 = vxpose.xlu0.b32.end [4/4] (short) (narrow) %v2540_v0, 16 }
 0xd2f   :  { %v2557_v62 = vpop.trf.xlu0 }
 0xd30   :  { %v2585_v41 = vmul.f32 %v2578_v21, %v2557_v62 }
 0xd32   :  { %v2587_v60 = vsel %vm341_vm5, %v2585_v41, 0.0 }
 0xd33   :  { %v2588_v40 = vrot.slane %v2587_v60, 4 }
 0xd35   :  { %v2589_v59 = vadd.f32 %v2588_v40, %v2587_v60 }
 0xd37   :  { %v2590_v2 = vrot.slane %v2589_v59, 2  ;;  %v2558_v44 = vpop.trf.xlu0 }
 0xd38   :  { %v2586_v63 = vmul.f32 %v2583_v57, %v2558_v44 }
 0xd39   :  { %v2591_v28 = vadd.f32 %v2590_v2, %v2589_v59 }
 0xd3a   :  { %v2594_v17 = vsel %vm341_vm5, %v2586_v63, 0.0  ;;  %vm2637_vm5 = vcmask 254976  }
 0xd3b   :  { %v2595_v37 = vrot.slane %v2594_v17, 4  ;;  %v2592_v43 = vrot.slane %v2591_v28, 1 }
 0xd3d   :  { %v2596_v51 = vadd.f32 %v2595_v37, %v2594_v17  ;;  %v2593_v48 = vadd.f32 %v2592_v43, %v2591_v28 }
 0xd3f   :  { %v2597_v8 = vrot.slane %v2596_v51, 2  ;;  %v2630_v13 = vmul.f32 %v2623_v12, %v2593_v48 }
 0xd41   :  { %v2598_v4 = vadd.f32 %v2597_v8, %v2596_v51 }
 0xd43   :  { %v2599_v11 = vrot.slane %v2598_v4, 1 }
 0xd45   :  { %v2600_v58 = vadd.f32 %v2599_v11, %v2598_v4 }
 0xd47   :  { %v2631_v14 = vmul.f32 %v2628_v24, %v2600_v58 }
 0xd49   :  { %v2635_v15 = vsel %vm2634_vm7, %v2631_v14, %v2630_v13 }
 0xd4a   :  { %2638 = vst.msk [vmem:[#allocation2] sm:$0x3] %vm2637_vm5, %v2635_v15 }
 0xd4b   :  { %2649 = dma.vmem_to_hbm [thread:$0]  %s2645_s1, 32, %s2647_s17, [#allocation3]  }
 0xd4c   :  { %3088 = dma.done.wait [#allocation3], 32  }
 0xd4d   :  { %3089 = vsyncadd [#allocation3], 4294967264 }
 0xd4e   :  { %2654 = vsyncpa [#allocation3], 1 }

</bundles_post_ra>
